<compile_context>
chip_gen: v5e
topology: v5e:2x2
jax: 0.10.0
libtpu: 0.0.40
codegen_flags: <defaults>
</compile_context>

<pallas_src>
import functools
import inspect

import jax
import jax.numpy as jnp
from jax.experimental import pallas as pl
from jax.experimental.pallas import tpu as pltpu


MAX_TILE_M = 512          # rows of activation per grid step in the fused matmuls
_LN_EPS = 1e-5
_NEG_INF = -1e30          # finite large-negative for the causal mask (bf16/f32 safe)


# ----------------------------- spec helpers --------------------------------


def _supports_pipeline_mode():
    if not hasattr(pl, "Buffered"):
        return False
    try:
        return "pipeline_mode" in inspect.signature(pl.BlockSpec.__init__).parameters
    except (TypeError, ValueError):
        return False


_HAS_PIPELINE_MODE = _supports_pipeline_mode()


def _const_spec(shape):
    """BlockSpec for a grid-invariant operand (same block every grid step).

    Single-buffered when supported: the block is revisited (never re-fetched),
    so double-buffering it only doubles its VMEM footprint."""
    idx = lambda *_: (0,) * len(shape)
    if _HAS_PIPELINE_MODE:
        return pl.BlockSpec(shape, idx, pipeline_mode=pl.Buffered(1))
    return pl.BlockSpec(shape, idx)


def _pick_tile_m(m, max_tile=MAX_TILE_M):
    """Largest multiple of 8 that divides m, is <= max_tile, and leaves >= 2
    grid steps (so the 'parallel' axis can shard across v7x's 2 TensorCores).
    m is always a multiple of 8 here (seq padded to 8)."""
    best = min(m, 8)
    t = 8
    limit = min(max_tile, m)
    while t <= limit:
        if m % t == 0 and (m // t) >= 2:
            best = t
        t += 8
    return best


def _pick_batch_block(b, max_bb=8):
    """Batch elements per attention grid step: amortize per-step overhead for
    large batches while keeping >= 2 grid steps for TC balance."""
    best = 1
    bb = 1
    while bb <= min(max_bb, b):
        if b % bb == 0 and (b // bb) >= 2:
            best = bb
        bb += 1
    return best


def _heads_per_group(n_heads, head_dim):
    """Heads processed per inner iteration; group lane-width kept <= 128 so the
    qkv Ref slices and the scratch stores are (at real CLIP sizes) tile-aligned,
    lane-dense 128-wide accesses."""
    hg = 1
    while (hg * 2 <= n_heads and n_heads % (hg * 2) == 0
           and head_dim * hg * 2 <= 128):
        hg *= 2
    return hg


# ----------------------------- Pallas kernels ------------------------------


def _ln_linear_kernel(x_ref, g_ref, beta_ref, w_ref, bias_ref, o_ref, *,
                      eps, activation):
    """Fused LayerNorm -> Linear (-> optional QuickGELU).

    x: [tm, d] f32, w: [d, n] bf16, output: [tm, n] (bf16 or f32).
    LN statistics, bias add and the activation are computed in f32;
    only the MXU operands are bf16."""
    x = x_ref[...].astype(jnp.float32)
    mean = jnp.mean(x, axis=-1, keepdims=True)
    var = jnp.mean(jnp.square(x - mean), axis=-1, keepdims=True)
    h = (x - mean) * jax.lax.rsqrt(var + eps)
    h = h * g_ref[...] + beta_ref[...]
    y = jnp.dot(h.astype(w_ref.dtype), w_ref[...],
                preferred_element_type=jnp.float32)
    y = y + bias_ref[...]
    if activation == "quickgelu":
        # CLIP QuickGELU: x * sigmoid(1.702 * x), in f32.
        y = y * jax.nn.sigmoid(1.702 * y)
    o_ref[...] = y.astype(o_ref.dtype)


def ln_linear(x, g, beta, w, bias, *, activation=None,
              out_dtype=jnp.bfloat16, eps=_LN_EPS):
    m, d = x.shape
    d2, n = w.shape
    assert d == d2
    tm = _pick_tile_m(m)
    return pl.pallas_call(
        functools.partial(_ln_linear_kernel, eps=eps, activation=activation),
        out_shape=jax.ShapeDtypeStruct((m, n), out_dtype),
        grid=(m // tm,),
        in_specs=[
            pl.BlockSpec((tm, d), lambda i: (i, 0)),
            _const_spec((1, d)),
            _const_spec((1, d)),
            _const_spec((d, n)),
            _const_spec((1, n)),
        ],
        out_specs=pl.BlockSpec((tm, n), lambda i: (i, 0)),
        compiler_params=pltpu.CompilerParams(
            dimension_semantics=("parallel",)),
    )(x, g.reshape(1, d), beta.reshape(1, d), w, bias.reshape(1, n))


def _linear_residual_kernel(x_ref, w_ref, bias_ref, res_ref, o_ref):
    """Fused Linear + bias + residual add. x/w bf16, residual & output f32."""
    y = jnp.dot(x_ref[...], w_ref[...], preferred_element_type=jnp.float32)
    y = y + bias_ref[...] + res_ref[...].astype(jnp.float32)
    o_ref[...] = y.astype(o_ref.dtype)


def linear_residual(x, w, bias, res):
    m, k = x.shape
    k2, n = w.shape
    assert k == k2 and res.shape == (m, n)
    tm = _pick_tile_m(m)
    return pl.pallas_call(
        _linear_residual_kernel,
        out_shape=jax.ShapeDtypeStruct((m, n), jnp.float32),
        grid=(m // tm,),
        in_specs=[
            pl.BlockSpec((tm, k), lambda i: (i, 0)),
            _const_spec((k, n)),
            _const_spec((1, n)),
            pl.BlockSpec((tm, n), lambda i: (i, 0)),
        ],
        out_specs=pl.BlockSpec((tm, n), lambda i: (i, 0)),
        compiler_params=pltpu.CompilerParams(
            dimension_semantics=("parallel",)),
    )(x, w, bias.reshape(1, n), res)


def _mha_outproj_kernel(qkv_ref, wo_ref, bo_ref, res_ref, o_ref, acc_ref, *,
                        n_heads, head_dim, heads_per_group, scale):
    """Fused causal multi-head attention + out_proj + bias + residual add.

    qkv_ref block: [bb, s, 3*d] bf16 (packed [q | k | v], each [s, d]).
    res_ref block: [bb, s, d] f32 residual stream.
    o_ref   block: [bb, s, d] f32.
    acc_ref      : [s, d] bf16 VMEM scratch holding the concatenated head
                   outputs for the current batch element (lane-dense stores,
                   one group at a time -> bounded vreg pressure, no spills).
    """
    bb, s, _ = qkv_ref.shape
    d = n_heads * head_dim
    gw = heads_per_group * head_dim
    n_groups = n_heads // heads_per_group

    row = jax.lax.broadcasted_iota(jnp.int32, (s, s), 0)
    col = jax.lax.broadcasted_iota(jnp.int32, (s, s), 1)
    causal = col <= row                                  # CLIP causal attn_mask

    for bi in range(bb):
        for g in range(n_groups):
            glo = g * gw
            # Slice the Ref directly, in <=128-lane groups (128-wide & aligned
            # at the real CLIP head_dim=64) - never load the whole [s, 3d] slab.
            q_g = qkv_ref[bi, :, glo:glo + gw]                       # [s, gw] bf16
            k_g = qkv_ref[bi, :, d + glo:d + glo + gw]
            v_g = qkv_ref[bi, :, 2 * d + glo:2 * d + glo + gw]

            head_outs = []
            for hh in range(heads_per_group):
                lo = hh * head_dim
                q = q_g[:, lo:lo + head_dim]
                k = k_g[:, lo:lo + head_dim]
                v = v_g[:, lo:lo + head_dim]
                # q @ k^T via dot_general (no in-kernel transpose), f32 accumulate.
                sc = jax.lax.dot_general(q, k, (((1,), (1,)), ((), ())),
                                         preferred_element_type=jnp.float32)
                sc = sc * scale
                sc = jnp.where(causal, sc, _NEG_INF)
                sc = sc - jnp.max(sc, axis=-1, keepdims=True)
                p = jnp.exp(sc)
                denom = jnp.sum(p, axis=-1, keepdims=True)
                p = p * pl.reciprocal(denom, approx=True)
                out_h = jnp.dot(p.astype(v.dtype), v,
                                preferred_element_type=jnp.float32)   # [s, dh]
                head_outs.append(out_h.astype(acc_ref.dtype))
            # Store this head-group's slice of the attention output immediately
            # (lane-dense gw-wide store) instead of keeping all heads live.
            acc_ref[:, glo:glo + gw] = jnp.concatenate(head_outs, axis=-1)

        # out_proj + bias + residual, riding the resident scratch.
        attn = acc_ref[...]                                          # [s, d] bf16
        y = jnp.dot(attn, wo_ref[...], preferred_element_type=jnp.float32)
        y = y + bo_ref[...] + res_ref[bi].astype(jnp.float32)
        o_ref[bi] = y.astype(o_ref.dtype)


def attention_block(qkv, wo, bo, res, *, n_heads, head_dim):
    """qkv: [b, s, 3d] bf16, wo: [d, d] bf16, bo: [d] f32, res: [b, s, d] f32."""
    b, s, d3 = qkv.shape
    d = n_heads * head_dim
    assert d3 == 3 * d and res.shape == (b, s, d)
    scale = head_dim ** -0.5
    hg = _heads_per_group(n_heads, head_dim)
    bb = _pick_batch_block(b)
    return pl.pallas_call(
        functools.partial(_mha_outproj_kernel, n_heads=n_heads,
                          head_dim=head_dim, heads_per_group=hg, scale=scale),
        out_shape=jax.ShapeDtypeStruct((b, s, d), jnp.float32),
        grid=(b // bb,),
        in_specs=[
            pl.BlockSpec((bb, s, d3), lambda i: (i, 0, 0)),
            _const_spec((d, d)),
            _const_spec((1, d)),
            pl.BlockSpec((bb, s, d), lambda i: (i, 0, 0)),
        ],
        out_specs=pl.BlockSpec((bb, s, d), lambda i: (i, 0, 0)),
        scratch_shapes=[pltpu.VMEM((s, d), jnp.bfloat16)],
        compiler_params=pltpu.CompilerParams(
            dimension_semantics=("parallel",)),
    )(qkv, wo, bo.reshape(1, d), res)


def _final_kernel(x_ref, g_ref, beta_ref, tp_ref, pw_ref, pb_ref, o_ref, *, eps):
    """ln_final -> @ text_projection -> cast f32 -> phrase2gra_proj.

    Applied only to the [batch, d] EOT rows (LayerNorm is per-row, so gathering
    the EOT token before ln_final is exactly equivalent to CLIP's order)."""
    x = x_ref[...].astype(jnp.float32)
    mean = jnp.mean(x, axis=-1, keepdims=True)
    var = jnp.mean(jnp.square(x - mean), axis=-1, keepdims=True)
    h = (x - mean) * jax.lax.rsqrt(var + eps)
    h = h * g_ref[...] + beta_ref[...]
    # text_features = ln(x_eot) @ text_projection  (f32 accumulate)
    t = jnp.dot(h.astype(tp_ref.dtype), tp_ref[...],
                preferred_element_type=jnp.float32)
    # .type(torch.float32) in the reference -> t is already f32 here.
    y = jnp.dot(t, pw_ref[...], preferred_element_type=jnp.float32)
    o_ref[...] = (y + pb_ref[...]).astype(o_ref.dtype)


def final_projection(x_eot, params, *, eps=_LN_EPS):
    b, d = x_eot.shape
    embed_dim = params["text_projection"].shape[1]
    out_dim = params["proj_w"].shape[1]
    return pl.pallas_call(
        functools.partial(_final_kernel, eps=eps),
        out_shape=jax.ShapeDtypeStruct((b, out_dim), jnp.float32),
        in_specs=[
            pl.BlockSpec((b, d), lambda: (0, 0)),
            pl.BlockSpec((1, d), lambda: (0, 0)),
            pl.BlockSpec((1, d), lambda: (0, 0)),
            pl.BlockSpec((d, embed_dim), lambda: (0, 0)),
            pl.BlockSpec((embed_dim, out_dim), lambda: (0, 0)),
            pl.BlockSpec((1, out_dim), lambda: (0, 0)),
        ],
        out_specs=pl.BlockSpec((b, out_dim), lambda: (0, 0)),
    )(x_eot,
      params["ln_final_g"].reshape(1, d),
      params["ln_final_b"].reshape(1, d),
      params["text_projection"],
      params["proj_w"],
      params["proj_b"].reshape(1, out_dim))


# ------------------------------ model (glue) -------------------------------


def residual_attention_block(x2d, p, *, n_heads, head_dim, b, s):
    """x2d: [b*s, d] f32 residual stream. Returns [b*s, d] f32."""
    d = n_heads * head_dim

    # --- attention branch: ln_1 + QKV proj fused; MHA + out_proj + residual fused
    qkv = ln_linear(x2d, p["ln1_g"], p["ln1_b"], p["attn_in_w"], p["attn_in_b"],
                    out_dtype=jnp.bfloat16)                       # [b*s, 3d] bf16
    x3 = attention_block(qkv.reshape(b, s, 3 * d),
                         p["attn_out_w"], p["attn_out_b"],
                         x2d.reshape(b, s, d),
                         n_heads=n_heads, head_dim=head_dim)      # [b, s, d] f32
    x2d = x3.reshape(b * s, d)

    # --- MLP branch: ln_2 + mlp_fc + QuickGELU fused; mlp_proj + residual fused
    h = ln_linear(x2d, p["ln2_g"], p["ln2_b"], p["mlp_fc_w"], p["mlp_fc_b"],
                  activation="quickgelu", out_dtype=jnp.bfloat16)  # [b*s, 4d] bf16
    x2d = linear_residual(h, p["mlp_proj_w"], p["mlp_proj_b"], x2d)  # f32
    return x2d


def clip_text_encoder_forward(tokens, params, *, n_heads):
    """tokens: int32 [batch, seq] (CLIP text tokens). Returns [batch, out_dim] f32."""
    b, s = tokens.shape
    d = params["token_embedding"].shape[1]
    head_dim = d // n_heads

    # Pad the sequence axis to a multiple of 8 (NOT 128: the lane-masking waste
    # in the [s,s] score matrix is far cheaper than inflating every FC matmul).
    # Padding sits at the END of the sequence; the causal mask guarantees real
    # positions never attend to padded ones, and padded rows are discarded
    # before the EOT gather.
    s_pad = ((s + 7) // 8) * 8

    # token embedding + positional embedding (cheap gather, left to XLA)
    x = jnp.take(params["token_embedding"], tokens, axis=0).astype(jnp.float32)
    x = x + params["positional_embedding"][None, :s, :].astype(jnp.float32)
    if s_pad != s:
        x = jnp.pad(x, ((0, 0), (0, s_pad - s), (0, 0)))

    x2d = x.reshape(b * s_pad, d)
    for layer_params in params["layers"]:
        x2d = residual_attention_block(x2d, layer_params,
                                       n_heads=n_heads, head_dim=head_dim,
                                       b=b, s=s_pad)
    x = x2d.reshape(b, s_pad, d)

    # EOT token = argmax over token ids (CLIP convention). LayerNorm is per-row,
    # so ln_final after the gather is exactly equivalent and far cheaper.
    # TODO(synk): the EOT row gather itself stays in XLA (data-dependent gather).
    eot_idx = jnp.argmax(tokens, axis=-1)
    x_eot = x[jnp.arange(b), eot_idx]                             # [b, d] f32

    # ln_final + text_projection + cast f32 + phrase2gra_proj, fused.
    return final_projection(x_eot, params)


# ------------------------------ parameter init ------------------------------


def init_params(key, *, vocab, ctx, width, n_heads, n_layers, embed_dim, out_dim):
    def nrm(k, shape, std=0.02, dtype=jnp.float32):
        return (std * jax.random.normal(k, shape)).astype(dtype)

    bf16 = jnp.bfloat16
    keys = jax.random.split(key, 6 + n_layers)
    params = {
        "token_embedding": nrm(keys[0], (vocab, width)),
        "positional_embedding": nrm(keys[1], (ctx, width), std=0.01),
        "ln_final_g": jnp.ones((width,), jnp.float32),
        "ln_final_b": jnp.zeros((width,), jnp.float32),
        # MXU operands stored in bf16; biases / LN params stay f32.
        "text_projection": nrm(keys[2], (width, embed_dim), std=width ** -0.5,
                               dtype=bf16),
        # phrase2gra_proj is a fresh f32 nn.Linear in the reference -> keep f32.
        "proj_w": nrm(keys[3], (embed_dim, out_dim), std=embed_dim ** -0.5),
        "proj_b": nrm(keys[4], (out_dim,), std=0.01),
        "layers": [],
    }
    for li in range(n_layers):
        ks = jax.random.split(keys[6 + li], 8)
        params["layers"].append({
            "ln1_g": jnp.ones((width,), jnp.float32),
            "ln1_b": jnp.zeros((width,), jnp.float32),
            "attn_in_w": nrm(ks[0], (width, 3 * width), dtype=bf16),
            "attn_in_b": nrm(ks[1], (3 * width,), std=0.01),
            "attn_out_w": nrm(ks[2], (width, width), dtype=bf16),
            "attn_out_b": nrm(ks[3], (width,), std=0.01),
            "ln2_g": jnp.ones((width,), jnp.float32),
            "ln2_b": jnp.zeros((width,), jnp.float32),
            "mlp_fc_w": nrm(ks[4], (width, 4 * width), dtype=bf16),
            "mlp_fc_b": nrm(ks[5], (4 * width,), std=0.01),
            "mlp_proj_w": nrm(ks[6], (4 * width, width), dtype=bf16),
            "mlp_proj_b": nrm(ks[7], (width,), std=0.01),
        })
    return params


# ---------------------------------- main ------------------------------------


if __name__ == "__main__":
    # Small synthetic config standing in for CLIP ViT-B/16 text tower
    # (real: vocab=49408, ctx=77, width=512, heads=8, layers=12,
    #  embed_dim=512, out_dim=768).
    VOCAB, CTX, WIDTH, HEADS, LAYERS = 64, 8, 32, 4, 2
    EMBED_DIM, OUT_DIM, BATCH = 32, 48, 2

    key = jax.random.PRNGKey(0)
    pkey, tkey = jax.random.split(key)
    params = init_params(pkey, vocab=VOCAB, ctx=CTX, width=WIDTH, n_heads=HEADS,
                         n_layers=LAYERS, embed_dim=EMBED_DIM, out_dim=OUT_DIM)

    # Deterministic "prompt" tokens; EOT token = highest id so argmax picks it,
    # mimicking CLIP's tokenizer convention.
    tokens = jax.random.randint(tkey, (BATCH, CTX), 1, VOCAB - 2, dtype=jnp.int32)
    eot_id = VOCAB - 1
    tokens = tokens.at[0, 5].set(eot_id)
    tokens = tokens.at[1, 7].set(eot_id)

    fwd = jax.jit(functools.partial(clip_text_encoder_forward, n_heads=HEADS))
    out = fwd(tokens, params)
    out = jax.block_until_ready(out)
    assert out.shape == (BATCH, OUT_DIM) and out.dtype == jnp.float32
    assert bool(jnp.all(jnp.isfinite(out)))
    print("KERNEL_OK")
</pallas_src>

<mosaic_0001>
module attributes {stable_mosaic.version = 11 : i64} {
  func.func @_ln_linear_kernel(%arg0: i32, %arg1: memref<8x32xf32, #tpu.memory_space<vmem>>, %arg2: memref<1x32xf32, #tpu.memory_space<vmem>>, %arg3: memref<1x32xf32, #tpu.memory_space<vmem>>, %arg4: memref<32x96xbf16, #tpu.memory_space<vmem>>, %arg5: memref<1x96xf32, #tpu.memory_space<vmem>>, %arg6: memref<8x96xbf16, #tpu.memory_space<vmem>>) attributes {dimension_semantics = [#tpu.dimension_semantics<parallel>], iteration_bounds = array<i64: 2>, scalar_prefetch = 0 : i64, scratch_operands = 0 : i64, tpu.core_type = #tpu.core_type<tc>, window_params = [{transform_indices = @transform_0, window_bounds = array<i64: 8, 32>}, {pipeline_mode = #tpu.pipeline_mode<synchronous>, transform_indices = @transform_1, window_bounds = array<i64: 1, 32>}, {pipeline_mode = #tpu.pipeline_mode<synchronous>, transform_indices = @transform_2, window_bounds = array<i64: 1, 32>}, {pipeline_mode = #tpu.pipeline_mode<synchronous>, transform_indices = @transform_3, window_bounds = array<i64: 32, 96>}, {pipeline_mode = #tpu.pipeline_mode<synchronous>, transform_indices = @transform_4, window_bounds = array<i64: 1, 96>}, {transform_indices = @transform_5, window_bounds = array<i64: 8, 96>}]} {
    %c0 = arith.constant 0 : index
    %c0_0 = arith.constant 0 : index
    %0 = vector.load %arg1[%c0, %c0_0] : memref<8x32xf32, #tpu.memory_space<vmem>>, vector<8x32xf32>
    %cst = arith.constant dense<0.000000e+00> : vector<8xf32>
    %1 = vector.multi_reduction <add>, %0, %cst [1] : vector<8x32xf32> to vector<8xf32>
    %2 = vector.shape_cast %1 : vector<8xf32> to vector<8x1xf32>
    %cst_1 = arith.constant 3.200000e+01 : f32
    %3 = vector.broadcast %cst_1 : f32 to vector<8x1xf32>
    %4 = arith.divf %2, %3 : vector<8x1xf32>
    %5 = vector.broadcast %4 : vector<8x1xf32> to vector<8x32xf32>
    %6 = arith.subf %0, %5 : vector<8x32xf32>
    %7 = arith.mulf %6, %6 : vector<8x32xf32>
    %cst_2 = arith.constant dense<0.000000e+00> : vector<8xf32>
    %8 = vector.multi_reduction <add>, %7, %cst_2 [1] : vector<8x32xf32> to vector<8xf32>
    %9 = vector.shape_cast %8 : vector<8xf32> to vector<8x1xf32>
    %cst_3 = arith.constant 3.200000e+01 : f32
    %10 = vector.broadcast %cst_3 : f32 to vector<8x1xf32>
    %11 = arith.divf %9, %10 : vector<8x1xf32>
    %12 = vector.broadcast %4 : vector<8x1xf32> to vector<8x32xf32>
    %13 = arith.subf %0, %12 : vector<8x32xf32>
    %cst_4 = arith.constant 9.99999974E-6 : f32
    %14 = vector.broadcast %cst_4 : f32 to vector<8x1xf32>
    %15 = arith.addf %11, %14 : vector<8x1xf32>
    %16 = math.rsqrt %15 : vector<8x1xf32>
    %17 = vector.broadcast %16 : vector<8x1xf32> to vector<8x32xf32>
    %18 = arith.mulf %13, %17 : vector<8x32xf32>
    %c0_5 = arith.constant 0 : index
    %c0_6 = arith.constant 0 : index
    %19 = vector.load %arg2[%c0_5, %c0_6] : memref<1x32xf32, #tpu.memory_space<vmem>>, vector<1x32xf32>
    %20 = vector.broadcast %19 : vector<1x32xf32> to vector<8x32xf32>
    %21 = arith.mulf %18, %20 : vector<8x32xf32>
    %c0_7 = arith.constant 0 : index
    %c0_8 = arith.constant 0 : index
    %22 = vector.load %arg3[%c0_7, %c0_8] : memref<1x32xf32, #tpu.memory_space<vmem>>, vector<1x32xf32>
    %23 = vector.broadcast %22 : vector<1x32xf32> to vector<8x32xf32>
    %24 = arith.addf %21, %23 : vector<8x32xf32>
    %25 = arith.truncf %24 : vector<8x32xf32> to vector<8x32xbf16>
    %c0_9 = arith.constant 0 : index
    %c0_10 = arith.constant 0 : index
    %26 = vector.load %arg4[%c0_9, %c0_10] : memref<32x96xbf16, #tpu.memory_space<vmem>>, vector<32x96xbf16>
    %cst_11 = arith.constant dense<0.000000e+00> : vector<8x96xf32>
    %27 = tpu.matmul %25, %26, %cst_11 {dimension_numbers = #tpu.dot_dimension_numbers<[1], [0], [0], [1], [0, 0, 1, 1], [], []>} : vector<8x32xbf16>, vector<32x96xbf16>, vector<8x96xf32> -> vector<8x96xf32>
    %c0_12 = arith.constant 0 : index
    %c0_13 = arith.constant 0 : index
    %28 = vector.load %arg5[%c0_12, %c0_13] : memref<1x96xf32, #tpu.memory_space<vmem>>, vector<1x96xf32>
    %29 = vector.broadcast %28 : vector<1x96xf32> to vector<8x96xf32>
    %30 = arith.addf %27, %29 : vector<8x96xf32>
    %31 = arith.truncf %30 : vector<8x96xf32> to vector<8x96xbf16>
    %c0_14 = arith.constant 0 : index
    %c0_15 = arith.constant 0 : index
    %32 = vector.load %arg6[%c0_14, %c0_15] : memref<8x96xbf16, #tpu.memory_space<vmem>>, vector<8x96xbf16>
    tpu.vector_store %arg6[%c0_14, %c0_15], %31 {strides = array<i32>} : memref<8x96xbf16, #tpu.memory_space<vmem>>, vector<8x96xbf16>,
    return
  }
  func.func @transform_0(%arg0: i32) -> (i32, i32) {
    %c0_i32 = arith.constant 0 : i32
    %c0_i32_0 = arith.constant 0 : i32
    return %arg0, %c0_i32 : i32, i32
  }
  func.func @transform_1(%arg0: i32) -> (i32, i32) {
    %c0_i32 = arith.constant 0 : i32
    %c0_i32_0 = arith.constant 0 : i32
    %c0_i32_1 = arith.constant 0 : i32
    return %c0_i32, %c0_i32_0 : i32, i32
  }
  func.func @transform_2(%arg0: i32) -> (i32, i32) {
    %c0_i32 = arith.constant 0 : i32
    %c0_i32_0 = arith.constant 0 : i32
    %c0_i32_1 = arith.constant 0 : i32
    return %c0_i32, %c0_i32_0 : i32, i32
  }
  func.func @transform_3(%arg0: i32) -> (i32, i32) {
    %c0_i32 = arith.constant 0 : i32
    %c0_i32_0 = arith.constant 0 : i32
    %c0_i32_1 = arith.constant 0 : i32
    return %c0_i32, %c0_i32_0 : i32, i32
  }
  func.func @transform_4(%arg0: i32) -> (i32, i32) {
    %c0_i32 = arith.constant 0 : i32
    %c0_i32_0 = arith.constant 0 : i32
    %c0_i32_1 = arith.constant 0 : i32
    return %c0_i32, %c0_i32_0 : i32, i32
  }
  func.func @transform_5(%arg0: i32) -> (i32, i32) {
    %c0_i32 = arith.constant 0 : i32
    %c0_i32_0 = arith.constant 0 : i32
    return %arg0, %c0_i32 : i32, i32
  }
}

module attributes {stable_mosaic.version = 11 : i64} {
  func.func @_mha_outproj_kernel(%arg0: i32, %arg1: memref<1x8x96xbf16, #tpu.memory_space<vmem>>, %arg2: memref<32x32xbf16, #tpu.memory_space<vmem>>, %arg3: memref<1x32xf32, #tpu.memory_space<vmem>>, %arg4: memref<1x8x32xf32, #tpu.memory_space<vmem>>, %arg5: memref<1x8x32xf32, #tpu.memory_space<vmem>>, %arg6: memref<8x32xbf16, #tpu.memory_space<vmem>>) attributes {dimension_semantics = [#tpu.dimension_semantics<parallel>], iteration_bounds = array<i64: 2>, scalar_prefetch = 0 : i64, scratch_operands = 1 : i64, tpu.core_type = #tpu.core_type<tc>, window_params = [{transform_indices = @transform_0, window_bounds = array<i64: 1, 8, 96>}, {pipeline_mode = #tpu.pipeline_mode<synchronous>, transform_indices = @transform_1, window_bounds = array<i64: 32, 32>}, {pipeline_mode = #tpu.pipeline_mode<synchronous>, transform_indices = @transform_2, window_bounds = array<i64: 1, 32>}, {transform_indices = @transform_3, window_bounds = array<i64: 1, 8, 32>}, {transform_indices = @transform_4, window_bounds = array<i64: 1, 8, 32>}]} {
    %0 = tpu.iota {dimensions = array<i32: 0>} : vector<8x8xi32>
    %1 = tpu.iota {dimensions = array<i32: 1>} : vector<8x8xi32>
    %2 = arith.cmpi sle, %1, %0 : vector<8x8xi32>
    %c0 = arith.constant 0 : index
    %c0_0 = arith.constant 0 : index
    %c0_1 = arith.constant 0 : index
    %3 = vector.load %arg1[%c0, %c0_0, %c0_1] : memref<1x8x96xbf16, #tpu.memory_space<vmem>>, vector<1x8x32xbf16>
    %4 = vector.shape_cast %3 : vector<1x8x32xbf16> to vector<8x32xbf16>
    %c0_2 = arith.constant 0 : index
    %c0_3 = arith.constant 0 : index
    %c32 = arith.constant 32 : index
    %5 = vector.load %arg1[%c0_2, %c0_3, %c32] : memref<1x8x96xbf16, #tpu.memory_space<vmem>>, vector<1x8x32xbf16>
    %6 = vector.shape_cast %5 : vector<1x8x32xbf16> to vector<8x32xbf16>
    %c0_4 = arith.constant 0 : index
    %c0_5 = arith.constant 0 : index
    %c64 = arith.constant 64 : index
    %7 = vector.load %arg1[%c0_4, %c0_5, %c64] : memref<1x8x96xbf16, #tpu.memory_space<vmem>>, vector<1x8x32xbf16>
    %8 = vector.shape_cast %7 : vector<1x8x32xbf16> to vector<8x32xbf16>
    %9 = vector.extract_strided_slice %4 {offsets = [0, 0], sizes = [8, 8], strides = [1, 1]} : vector<8x32xbf16> to vector<8x8xbf16>
    %10 = vector.extract_strided_slice %6 {offsets = [0, 0], sizes = [8, 8], strides = [1, 1]} : vector<8x32xbf16> to vector<8x8xbf16>
    %11 = vector.extract_strided_slice %8 {offsets = [0, 0], sizes = [8, 8], strides = [1, 1]} : vector<8x32xbf16> to vector<8x8xbf16>
    %cst = arith.constant dense<0.000000e+00> : vector<8x8xf32>
    %12 = tpu.matmul %9, %10, %cst {dimension_numbers = #tpu.dot_dimension_numbers<[1], [1], [0], [0], [0, 0, 1, 0], [], []>} : vector<8x8xbf16>, vector<8x8xbf16>, vector<8x8xf32> -> vector<8x8xf32>
    %cst_6 = arith.constant 0.353553385 : f32
    %13 = vector.broadcast %cst_6 : f32 to vector<8x8xf32>
    %14 = arith.mulf %12, %13 : vector<8x8xf32>
    %cst_7 = arith.constant -1.000000e+30 : f32
    %15 = vector.broadcast %cst_7 : f32 to vector<8x8xf32>
    %16 = arith.select %2, %14, %15 : vector<8x8xi1>, vector<8x8xf32>
    %cst_8 = arith.constant dense<0xFF800000> : vector<8xf32>
    %17 = vector.multi_reduction <maximumf>, %16, %cst_8 [1] : vector<8x8xf32> to vector<8xf32>
    %18 = vector.shape_cast %17 : vector<8xf32> to vector<8x1xf32>
    %19 = vector.broadcast %18 : vector<8x1xf32> to vector<8x8xf32>
    %20 = arith.subf %16, %19 : vector<8x8xf32>
    %21 = math.exp %20 : vector<8x8xf32>
    %cst_9 = arith.constant dense<0.000000e+00> : vector<8xf32>
    %22 = vector.multi_reduction <add>, %21, %cst_9 [1] : vector<8x8xf32> to vector<8xf32>
    %23 = vector.shape_cast %22 : vector<8xf32> to vector<8x1xf32>
    %24 = tpu.reciprocal %23 {approx = true} : vector<8x1xf32> -> vector<8x1xf32>
    %25 = vector.broadcast %24 : vector<8x1xf32> to vector<8x8xf32>
    %26 = arith.mulf %21, %25 : vector<8x8xf32>
    %27 = arith.truncf %26 : vector<8x8xf32> to vector<8x8xbf16>
    %cst_10 = arith.constant dense<0.000000e+00> : vector<8x8xf32>
    %28 = tpu.matmul %27, %11, %cst_10 {dimension_numbers = #tpu.dot_dimension_numbers<[1], [0], [0], [1], [0, 0, 1, 1], [], []>} : vector<8x8xbf16>, vector<8x8xbf16>, vector<8x8xf32> -> vector<8x8xf32>
    %29 = arith.truncf %28 : vector<8x8xf32> to vector<8x8xbf16>
    %30 = vector.extract_strided_slice %4 {offsets = [0, 8], sizes = [8, 8], strides = [1, 1]} : vector<8x32xbf16> to vector<8x8xbf16>
    %31 = vector.extract_strided_slice %6 {offsets = [0, 8], sizes = [8, 8], strides = [1, 1]} : vector<8x32xbf16> to vector<8x8xbf16>
    %32 = vector.extract_strided_slice %8 {offsets = [0, 8], sizes = [8, 8], strides = [1, 1]} : vector<8x32xbf16> to vector<8x8xbf16>
    %cst_11 = arith.constant dense<0.000000e+00> : vector<8x8xf32>
    %33 = tpu.matmul %30, %31, %cst_11 {dimension_numbers = #tpu.dot_dimension_numbers<[1], [1], [0], [0], [0, 0, 1, 0], [], []>} : vector<8x8xbf16>, vector<8x8xbf16>, vector<8x8xf32> -> vector<8x8xf32>
    %cst_12 = arith.constant 0.353553385 : f32
    %34 = vector.broadcast %cst_12 : f32 to vector<8x8xf32>
    %35 = arith.mulf %33, %34 : vector<8x8xf32>
    %cst_13 = arith.constant -1.000000e+30 : f32
    %36 = vector.broadcast %cst_13 : f32 to vector<8x8xf32>
    %37 = arith.select %2, %35, %36 : vector<8x8xi1>, vector<8x8xf32>
    %cst_14 = arith.constant dense<0xFF800000> : vector<8xf32>
    %38 = vector.multi_reduction <maximumf>, %37, %cst_14 [1] : vector<8x8xf32> to vector<8xf32>
    %39 = vector.shape_cast %38 : vector<8xf32> to vector<8x1xf32>
    %40 = vector.broadcast %39 : vector<8x1xf32> to vector<8x8xf32>
    %41 = arith.subf %37, %40 : vector<8x8xf32>
    %42 = math.exp %41 : vector<8x8xf32>
    %cst_15 = arith.constant dense<0.000000e+00> : vector<8xf32>
    %43 = vector.multi_reduction <add>, %42, %cst_15 [1] : vector<8x8xf32> to vector<8xf32>
    %44 = vector.shape_cast %43 : vector<8xf32> to vector<8x1xf32>
    %45 = tpu.reciprocal %44 {approx = true} : vector<8x1xf32> -> vector<8x1xf32>
    %46 = vector.broadcast %45 : vector<8x1xf32> to vector<8x8xf32>
    %47 = arith.mulf %42, %46 : vector<8x8xf32>
    %48 = arith.truncf %47 : vector<8x8xf32> to vector<8x8xbf16>
    %cst_16 = arith.constant dense<0.000000e+00> : vector<8x8xf32>
    %49 = tpu.matmul %48, %32, %cst_16 {dimension_numbers = #tpu.dot_dimension_numbers<[1], [0], [0], [1], [0, 0, 1, 1], [], []>} : vector<8x8xbf16>, vector<8x8xbf16>, vector<8x8xf32> -> vector<8x8xf32>
    %50 = arith.truncf %49 : vector<8x8xf32> to vector<8x8xbf16>
    %51 = vector.extract_strided_slice %4 {offsets = [0, 16], sizes = [8, 8], strides = [1, 1]} : vector<8x32xbf16> to vector<8x8xbf16>
    %52 = vector.extract_strided_slice %6 {offsets = [0, 16], sizes = [8, 8], strides = [1, 1]} : vector<8x32xbf16> to vector<8x8xbf16>
    %53 = vector.extract_strided_slice %8 {offsets = [0, 16], sizes = [8, 8], strides = [1, 1]} : vector<8x32xbf16> to vector<8x8xbf16>
    %cst_17 = arith.constant dense<0.000000e+00> : vector<8x8xf32>
    %54 = tpu.matmul %51, %52, %cst_17 {dimension_numbers = #tpu.dot_dimension_numbers<[1], [1], [0], [0], [0, 0, 1, 0], [], []>} : vector<8x8xbf16>, vector<8x8xbf16>, vector<8x8xf32> -> vector<8x8xf32>
    %cst_18 = arith.constant 0.353553385 : f32
    %55 = vector.broadcast %cst_18 : f32 to vector<8x8xf32>
    %56 = arith.mulf %54, %55 : vector<8x8xf32>
    %cst_19 = arith.constant -1.000000e+30 : f32
    %57 = vector.broadcast %cst_19 : f32 to vector<8x8xf32>
    %58 = arith.select %2, %56, %57 : vector<8x8xi1>, vector<8x8xf32>
    %cst_20 = arith.constant dense<0xFF800000> : vector<8xf32>
    %59 = vector.multi_reduction <maximumf>, %58, %cst_20 [1] : vector<8x8xf32> to vector<8xf32>
    %60 = vector.shape_cast %59 : vector<8xf32> to vector<8x1xf32>
    %61 = vector.broadcast %60 : vector<8x1xf32> to vector<8x8xf32>
    %62 = arith.subf %58, %61 : vector<8x8xf32>
    %63 = math.exp %62 : vector<8x8xf32>
    %cst_21 = arith.constant dense<0.000000e+00> : vector<8xf32>
    %64 = vector.multi_reduction <add>, %63, %cst_21 [1] : vector<8x8xf32> to vector<8xf32>
    %65 = vector.shape_cast %64 : vector<8xf32> to vector<8x1xf32>
    %66 = tpu.reciprocal %65 {approx = true} : vector<8x1xf32> -> vector<8x1xf32>
    %67 = vector.broadcast %66 : vector<8x1xf32> to vector<8x8xf32>
    %68 = arith.mulf %63, %67 : vector<8x8xf32>
    %69 = arith.truncf %68 : vector<8x8xf32> to vector<8x8xbf16>
    %cst_22 = arith.constant dense<0.000000e+00> : vector<8x8xf32>
    %70 = tpu.matmul %69, %53, %cst_22 {dimension_numbers = #tpu.dot_dimension_numbers<[1], [0], [0], [1], [0, 0, 1, 1], [], []>} : vector<8x8xbf16>, vector<8x8xbf16>, vector<8x8xf32> -> vector<8x8xf32>
    %71 = arith.truncf %70 : vector<8x8xf32> to vector<8x8xbf16>
    %72 = vector.extract_strided_slice %4 {offsets = [0, 24], sizes = [8, 8], strides = [1, 1]} : vector<8x32xbf16> to vector<8x8xbf16>
    %73 = vector.extract_strided_slice %6 {offsets = [0, 24], sizes = [8, 8], strides = [1, 1]} : vector<8x32xbf16> to vector<8x8xbf16>
    %74 = vector.extract_strided_slice %8 {offsets = [0, 24], sizes = [8, 8], strides = [1, 1]} : vector<8x32xbf16> to vector<8x8xbf16>
    %cst_23 = arith.constant dense<0.000000e+00> : vector<8x8xf32>
    %75 = tpu.matmul %72, %73, %cst_23 {dimension_numbers = #tpu.dot_dimension_numbers<[1], [1], [0], [0], [0, 0, 1, 0], [], []>} : vector<8x8xbf16>, vector<8x8xbf16>, vector<8x8xf32> -> vector<8x8xf32>
    %cst_24 = arith.constant 0.353553385 : f32
    %76 = vector.broadcast %cst_24 : f32 to vector<8x8xf32>
    %77 = arith.mulf %75, %76 : vector<8x8xf32>
    %cst_25 = arith.constant -1.000000e+30 : f32
    %78 = vector.broadcast %cst_25 : f32 to vector<8x8xf32>
    %79 = arith.select %2, %77, %78 : vector<8x8xi1>, vector<8x8xf32>
    %cst_26 = arith.constant dense<0xFF800000> : vector<8xf32>
    %80 = vector.multi_reduction <maximumf>, %79, %cst_26 [1] : vector<8x8xf32> to vector<8xf32>
    %81 = vector.shape_cast %80 : vector<8xf32> to vector<8x1xf32>
    %82 = vector.broadcast %81 : vector<8x1xf32> to vector<8x8xf32>
    %83 = arith.subf %79, %82 : vector<8x8xf32>
    %84 = math.exp %83 : vector<8x8xf32>
    %cst_27 = arith.constant dense<0.000000e+00> : vector<8xf32>
    %85 = vector.multi_reduction <add>, %84, %cst_27 [1] : vector<8x8xf32> to vector<8xf32>
    %86 = vector.shape_cast %85 : vector<8xf32> to vector<8x1xf32>
    %87 = tpu.reciprocal %86 {approx = true} : vector<8x1xf32> -> vector<8x1xf32>
    %88 = vector.broadcast %87 : vector<8x1xf32> to vector<8x8xf32>
    %89 = arith.mulf %84, %88 : vector<8x8xf32>
    %90 = arith.truncf %89 : vector<8x8xf32> to vector<8x8xbf16>
    %cst_28 = arith.constant dense<0.000000e+00> : vector<8x8xf32>
    %91 = tpu.matmul %90, %74, %cst_28 {dimension_numbers = #tpu.dot_dimension_numbers<[1], [0], [0], [1], [0, 0, 1, 1], [], []>} : vector<8x8xbf16>, vector<8x8xbf16>, vector<8x8xf32> -> vector<8x8xf32>
    %92 = arith.truncf %91 : vector<8x8xf32> to vector<8x8xbf16>
    %93 = tpu.concatenate %29, %50, %71, %92 in 1 : vector<8x8xbf16>, vector<8x8xbf16>, vector<8x8xbf16>, vector<8x8xbf16> -> vector<8x32xbf16>
    %c0_29 = arith.constant 0 : index
    %c0_30 = arith.constant 0 : index
    %94 = vector.load %arg6[%c0_29, %c0_30] : memref<8x32xbf16, #tpu.memory_space<vmem>>, vector<8x32xbf16>
    tpu.vector_store %arg6[%c0_29, %c0_30], %93 {strides = array<i32>} : memref<8x32xbf16, #tpu.memory_space<vmem>>, vector<8x32xbf16>,
    %c0_31 = arith.constant 0 : index
    %c0_32 = arith.constant 0 : index
    %95 = vector.load %arg6[%c0_31, %c0_32] : memref<8x32xbf16, #tpu.memory_space<vmem>>, vector<8x32xbf16>
    %c0_33 = arith.constant 0 : index
    %c0_34 = arith.constant 0 : index
    %96 = vector.load %arg2[%c0_33, %c0_34] : memref<32x32xbf16, #tpu.memory_space<vmem>>, vector<32x32xbf16>
    %cst_35 = arith.constant dense<0.000000e+00> : vector<8x32xf32>
    %97 = tpu.matmul %95, %96, %cst_35 {dimension_numbers = #tpu.dot_dimension_numbers<[1], [0], [0], [1], [0, 0, 1, 1], [], []>} : vector<8x32xbf16>, vector<32x32xbf16>, vector<8x32xf32> -> vector<8x32xf32>
    %c0_36 = arith.constant 0 : index
    %c0_37 = arith.constant 0 : index
    %98 = vector.load %arg3[%c0_36, %c0_37] : memref<1x32xf32, #tpu.memory_space<vmem>>, vector<1x32xf32>
    %99 = vector.broadcast %98 : vector<1x32xf32> to vector<8x32xf32>
    %100 = arith.addf %97, %99 : vector<8x32xf32>
    %c0_38 = arith.constant 0 : index
    %c0_39 = arith.constant 0 : index
    %c0_40 = arith.constant 0 : index
    %101 = vector.load %arg4[%c0_38, %c0_39, %c0_40] : memref<1x8x32xf32, #tpu.memory_space<vmem>>, vector<1x8x32xf32>
    %102 = vector.shape_cast %101 : vector<1x8x32xf32> to vector<8x32xf32>
    %103 = arith.addf %100, %102 : vector<8x32xf32>
    %c0_41 = arith.constant 0 : index
    %c0_42 = arith.constant 0 : index
    %c0_43 = arith.constant 0 : index
    %104 = vector.load %arg5[%c0_41, %c0_42, %c0_43] : memref<1x8x32xf32, #tpu.memory_space<vmem>>, vector<1x8x32xf32>
    %105 = vector.shape_cast %104 : vector<1x8x32xf32> to vector<8x32xf32>
    %106 = vector.shape_cast %103 : vector<8x32xf32> to vector<1x8x32xf32>
    tpu.vector_store %arg5[%c0_41, %c0_42, %c0_43], %106 {strides = array<i32>} : memref<1x8x32xf32, #tpu.memory_space<vmem>>, vector<1x8x32xf32>,
    return
  }
  func.func @transform_0(%arg0: i32) -> (i32, i32, i32) {
    %c0_i32 = arith.constant 0 : i32
    %c0_i32_0 = arith.constant 0 : i32
    %c0_i32_1 = arith.constant 0 : i32
    return %arg0, %c0_i32, %c0_i32_0 : i32, i32, i32
  }
  func.func @transform_1(%arg0: i32) -> (i32, i32) {
    %c0_i32 = arith.constant 0 : i32
    %c0_i32_0 = arith.constant 0 : i32
    %c0_i32_1 = arith.constant 0 : i32
    return %c0_i32, %c0_i32_0 : i32, i32
  }
  func.func @transform_2(%arg0: i32) -> (i32, i32) {
    %c0_i32 = arith.constant 0 : i32
    %c0_i32_0 = arith.constant 0 : i32
    %c0_i32_1 = arith.constant 0 : i32
    return %c0_i32, %c0_i32_0 : i32, i32
  }
  func.func @transform_3(%arg0: i32) -> (i32, i32, i32) {
    %c0_i32 = arith.constant 0 : i32
    %c0_i32_0 = arith.constant 0 : i32
    %c0_i32_1 = arith.constant 0 : i32
    return %arg0, %c0_i32, %c0_i32_0 : i32, i32, i32
  }
  func.func @transform_4(%arg0: i32) -> (i32, i32, i32) {
    %c0_i32 = arith.constant 0 : i32
    %c0_i32_0 = arith.constant 0 : i32
    %c0_i32_1 = arith.constant 0 : i32
    return %arg0, %c0_i32, %c0_i32_0 : i32, i32, i32
  }
}

module attributes {stable_mosaic.version = 11 : i64} {
  func.func @_ln_linear_kernel(%arg0: i32, %arg1: memref<8x32xf32, #tpu.memory_space<vmem>>, %arg2: memref<1x32xf32, #tpu.memory_space<vmem>>, %arg3: memref<1x32xf32, #tpu.memory_space<vmem>>, %arg4: memref<32x128xbf16, #tpu.memory_space<vmem>>, %arg5: memref<1x128xf32, #tpu.memory_space<vmem>>, %arg6: memref<8x128xbf16, #tpu.memory_space<vmem>>) attributes {dimension_semantics = [#tpu.dimension_semantics<parallel>], iteration_bounds = array<i64: 2>, scalar_prefetch = 0 : i64, scratch_operands = 0 : i64, tpu.core_type = #tpu.core_type<tc>, window_params = [{transform_indices = @transform_0, window_bounds = array<i64: 8, 32>}, {pipeline_mode = #tpu.pipeline_mode<synchronous>, transform_indices = @transform_1, window_bounds = array<i64: 1, 32>}, {pipeline_mode = #tpu.pipeline_mode<synchronous>, transform_indices = @transform_2, window_bounds = array<i64: 1, 32>}, {pipeline_mode = #tpu.pipeline_mode<synchronous>, transform_indices = @transform_3, window_bounds = array<i64: 32, 128>}, {pipeline_mode = #tpu.pipeline_mode<synchronous>, transform_indices = @transform_4, window_bounds = array<i64: 1, 128>}, {transform_indices = @transform_5, window_bounds = array<i64: 8, 128>}]} {
    %c0 = arith.constant 0 : index
    %c0_0 = arith.constant 0 : index
    %0 = vector.load %arg1[%c0, %c0_0] : memref<8x32xf32, #tpu.memory_space<vmem>>, vector<8x32xf32>
    %cst = arith.constant dense<0.000000e+00> : vector<8xf32>
    %1 = vector.multi_reduction <add>, %0, %cst [1] : vector<8x32xf32> to vector<8xf32>
    %2 = vector.shape_cast %1 : vector<8xf32> to vector<8x1xf32>
    %cst_1 = arith.constant 3.200000e+01 : f32
    %3 = vector.broadcast %cst_1 : f32 to vector<8x1xf32>
    %4 = arith.divf %2, %3 : vector<8x1xf32>
    %5 = vector.broadcast %4 : vector<8x1xf32> to vector<8x32xf32>
    %6 = arith.subf %0, %5 : vector<8x32xf32>
    %7 = arith.mulf %6, %6 : vector<8x32xf32>
    %cst_2 = arith.constant dense<0.000000e+00> : vector<8xf32>
    %8 = vector.multi_reduction <add>, %7, %cst_2 [1] : vector<8x32xf32> to vector<8xf32>
    %9 = vector.shape_cast %8 : vector<8xf32> to vector<8x1xf32>
    %cst_3 = arith.constant 3.200000e+01 : f32
    %10 = vector.broadcast %cst_3 : f32 to vector<8x1xf32>
    %11 = arith.divf %9, %10 : vector<8x1xf32>
    %12 = vector.broadcast %4 : vector<8x1xf32> to vector<8x32xf32>
    %13 = arith.subf %0, %12 : vector<8x32xf32>
    %cst_4 = arith.constant 9.99999974E-6 : f32
    %14 = vector.broadcast %cst_4 : f32 to vector<8x1xf32>
    %15 = arith.addf %11, %14 : vector<8x1xf32>
    %16 = math.rsqrt %15 : vector<8x1xf32>
    %17 = vector.broadcast %16 : vector<8x1xf32> to vector<8x32xf32>
    %18 = arith.mulf %13, %17 : vector<8x32xf32>
    %c0_5 = arith.constant 0 : index
    %c0_6 = arith.constant 0 : index
    %19 = vector.load %arg2[%c0_5, %c0_6] : memref<1x32xf32, #tpu.memory_space<vmem>>, vector<1x32xf32>
    %20 = vector.broadcast %19 : vector<1x32xf32> to vector<8x32xf32>
    %21 = arith.mulf %18, %20 : vector<8x32xf32>
    %c0_7 = arith.constant 0 : index
    %c0_8 = arith.constant 0 : index
    %22 = vector.load %arg3[%c0_7, %c0_8] : memref<1x32xf32, #tpu.memory_space<vmem>>, vector<1x32xf32>
    %23 = vector.broadcast %22 : vector<1x32xf32> to vector<8x32xf32>
    %24 = arith.addf %21, %23 : vector<8x32xf32>
    %25 = arith.truncf %24 : vector<8x32xf32> to vector<8x32xbf16>
    %c0_9 = arith.constant 0 : index
    %c0_10 = arith.constant 0 : index
    %26 = vector.load %arg4[%c0_9, %c0_10] : memref<32x128xbf16, #tpu.memory_space<vmem>>, vector<32x128xbf16>
    %cst_11 = arith.constant dense<0.000000e+00> : vector<8x128xf32>
    %27 = tpu.matmul %25, %26, %cst_11 {dimension_numbers = #tpu.dot_dimension_numbers<[1], [0], [0], [1], [0, 0, 1, 1], [], []>} : vector<8x32xbf16>, vector<32x128xbf16>, vector<8x128xf32> -> vector<8x128xf32>
    %c0_12 = arith.constant 0 : index
    %c0_13 = arith.constant 0 : index
    %28 = vector.load %arg5[%c0_12, %c0_13] : memref<1x128xf32, #tpu.memory_space<vmem>>, vector<1x128xf32>
    %29 = vector.broadcast %28 : vector<1x128xf32> to vector<8x128xf32>
    %30 = arith.addf %27, %29 : vector<8x128xf32>
    %cst_14 = arith.constant 1.702000e+00 : f32
    %31 = vector.broadcast %cst_14 : f32 to vector<8x128xf32>
    %32 = arith.mulf %31, %30 : vector<8x128xf32>
    %33 = arith.negf %32 : vector<8x128xf32>
    %34 = math.exp %33 : vector<8x128xf32>
    %cst_15 = arith.constant 1.000000e+00 : f32
    %35 = vector.broadcast %cst_15 : f32 to vector<8x128xf32>
    %36 = arith.addf %35, %34 : vector<8x128xf32>
    %37 = arith.divf %35, %36 : vector<8x128xf32>
    %38 = arith.mulf %30, %37 : vector<8x128xf32>
    %39 = arith.truncf %38 : vector<8x128xf32> to vector<8x128xbf16>
    %c0_16 = arith.constant 0 : index
    %c0_17 = arith.constant 0 : index
    %40 = vector.load %arg6[%c0_16, %c0_17] : memref<8x128xbf16, #tpu.memory_space<vmem>>, vector<8x128xbf16>
    tpu.vector_store %arg6[%c0_16, %c0_17], %39 {strides = array<i32>} : memref<8x128xbf16, #tpu.memory_space<vmem>>, vector<8x128xbf16>,
    return
  }
  func.func @transform_0(%arg0: i32) -> (i32, i32) {
    %c0_i32 = arith.constant 0 : i32
    %c0_i32_0 = arith.constant 0 : i32
    return %arg0, %c0_i32 : i32, i32
  }
  func.func @transform_1(%arg0: i32) -> (i32, i32) {
    %c0_i32 = arith.constant 0 : i32
    %c0_i32_0 = arith.constant 0 : i32
    %c0_i32_1 = arith.constant 0 : i32
    return %c0_i32, %c0_i32_0 : i32, i32
  }
  func.func @transform_2(%arg0: i32) -> (i32, i32) {
    %c0_i32 = arith.constant 0 : i32
    %c0_i32_0 = arith.constant 0 : i32
    %c0_i32_1 = arith.constant 0 : i32
    return %c0_i32, %c0_i32_0 : i32, i32
  }
  func.func @transform_3(%arg0: i32) -> (i32, i32) {
    %c0_i32 = arith.constant 0 : i32
    %c0_i32_0 = arith.constant 0 : i32
    %c0_i32_1 = arith.constant 0 : i32
    return %c0_i32, %c0_i32_0 : i32, i32
  }
  func.func @transform_4(%arg0: i32) -> (i32, i32) {
    %c0_i32 = arith.constant 0 : i32
    %c0_i32_0 = arith.constant 0 : i32
    %c0_i32_1 = arith.constant 0 : i32
    return %c0_i32, %c0_i32_0 : i32, i32
  }
  func.func @transform_5(%arg0: i32) -> (i32, i32) {
    %c0_i32 = arith.constant 0 : i32
    %c0_i32_0 = arith.constant 0 : i32
    return %arg0, %c0_i32 : i32, i32
  }
}

module attributes {stable_mosaic.version = 11 : i64} {
  func.func @_linear_residual_kernel(%arg0: i32, %arg1: memref<8x128xbf16, #tpu.memory_space<vmem>>, %arg2: memref<128x32xbf16, #tpu.memory_space<vmem>>, %arg3: memref<1x32xf32, #tpu.memory_space<vmem>>, %arg4: memref<8x32xf32, #tpu.memory_space<vmem>>, %arg5: memref<8x32xf32, #tpu.memory_space<vmem>>) attributes {dimension_semantics = [#tpu.dimension_semantics<parallel>], iteration_bounds = array<i64: 2>, scalar_prefetch = 0 : i64, scratch_operands = 0 : i64, tpu.core_type = #tpu.core_type<tc>, window_params = [{transform_indices = @transform_0, window_bounds = array<i64: 8, 128>}, {pipeline_mode = #tpu.pipeline_mode<synchronous>, transform_indices = @transform_1, window_bounds = array<i64: 128, 32>}, {pipeline_mode = #tpu.pipeline_mode<synchronous>, transform_indices = @transform_2, window_bounds = array<i64: 1, 32>}, {transform_indices = @transform_3, window_bounds = array<i64: 8, 32>}, {transform_indices = @transform_4, window_bounds = array<i64: 8, 32>}]} {
    %c0 = arith.constant 0 : index
    %c0_0 = arith.constant 0 : index
    %0 = vector.load %arg1[%c0, %c0_0] : memref<8x128xbf16, #tpu.memory_space<vmem>>, vector<8x128xbf16>
    %c0_1 = arith.constant 0 : index
    %c0_2 = arith.constant 0 : index
    %1 = vector.load %arg2[%c0_1, %c0_2] : memref<128x32xbf16, #tpu.memory_space<vmem>>, vector<128x32xbf16>
    %cst = arith.constant dense<0.000000e+00> : vector<8x32xf32>
    %2 = tpu.matmul %0, %1, %cst {dimension_numbers = #tpu.dot_dimension_numbers<[1], [0], [0], [1], [0, 0, 1, 1], [], []>} : vector<8x128xbf16>, vector<128x32xbf16>, vector<8x32xf32> -> vector<8x32xf32>
    %c0_3 = arith.constant 0 : index
    %c0_4 = arith.constant 0 : index
    %3 = vector.load %arg3[%c0_3, %c0_4] : memref<1x32xf32, #tpu.memory_space<vmem>>, vector<1x32xf32>
    %4 = vector.broadcast %3 : vector<1x32xf32> to vector<8x32xf32>
    %5 = arith.addf %2, %4 : vector<8x32xf32>
    %c0_5 = arith.constant 0 : index
    %c0_6 = arith.constant 0 : index
    %6 = vector.load %arg4[%c0_5, %c0_6] : memref<8x32xf32, #tpu.memory_space<vmem>>, vector<8x32xf32>
    %7 = arith.addf %5, %6 : vector<8x32xf32>
    %c0_7 = arith.constant 0 : index
    %c0_8 = arith.constant 0 : index
    %8 = vector.load %arg5[%c0_7, %c0_8] : memref<8x32xf32, #tpu.memory_space<vmem>>, vector<8x32xf32>
    tpu.vector_store %arg5[%c0_7, %c0_8], %7 {strides = array<i32>} : memref<8x32xf32, #tpu.memory_space<vmem>>, vector<8x32xf32>,
    return
  }
  func.func @transform_0(%arg0: i32) -> (i32, i32) {
    %c0_i32 = arith.constant 0 : i32
    %c0_i32_0 = arith.constant 0 : i32
    return %arg0, %c0_i32 : i32, i32
  }
  func.func @transform_1(%arg0: i32) -> (i32, i32) {
    %c0_i32 = arith.constant 0 : i32
    %c0_i32_0 = arith.constant 0 : i32
    %c0_i32_1 = arith.constant 0 : i32
    return %c0_i32, %c0_i32_0 : i32, i32
  }
  func.func @transform_2(%arg0: i32) -> (i32, i32) {
    %c0_i32 = arith.constant 0 : i32
    %c0_i32_0 = arith.constant 0 : i32
    %c0_i32_1 = arith.constant 0 : i32
    return %c0_i32, %c0_i32_0 : i32, i32
  }
  func.func @transform_3(%arg0: i32) -> (i32, i32) {
    %c0_i32 = arith.constant 0 : i32
    %c0_i32_0 = arith.constant 0 : i32
    return %arg0, %c0_i32 : i32, i32
  }
  func.func @transform_4(%arg0: i32) -> (i32, i32) {
    %c0_i32 = arith.constant 0 : i32
    %c0_i32_0 = arith.constant 0 : i32
    return %arg0, %c0_i32 : i32, i32
  }
}

module attributes {stable_mosaic.version = 11 : i64} {
  func.func @_final_kernel(%arg0: memref<2x32xf32, #tpu.memory_space<vmem>>, %arg1: memref<1x32xf32, #tpu.memory_space<vmem>>, %arg2: memref<1x32xf32, #tpu.memory_space<vmem>>, %arg3: memref<32x32xbf16, #tpu.memory_space<vmem>>, %arg4: memref<32x48xf32, #tpu.memory_space<vmem>>, %arg5: memref<1x48xf32, #tpu.memory_space<vmem>>, %arg6: memref<2x48xf32, #tpu.memory_space<vmem>>) attributes {dimension_semantics = [], scalar_prefetch = 0 : i64, scratch_operands = 0 : i64, tpu.core_type = #tpu.core_type<tc>} {
    %c0 = arith.constant 0 : index
    %c0_0 = arith.constant 0 : index
    %0 = vector.load %arg0[%c0, %c0_0] : memref<2x32xf32, #tpu.memory_space<vmem>>, vector<2x32xf32>
    %cst = arith.constant dense<0.000000e+00> : vector<2xf32>
    %1 = vector.multi_reduction <add>, %0, %cst [1] : vector<2x32xf32> to vector<2xf32>
    %2 = vector.shape_cast %1 : vector<2xf32> to vector<2x1xf32>
    %cst_1 = arith.constant 3.200000e+01 : f32
    %3 = vector.broadcast %cst_1 : f32 to vector<2x1xf32>
    %4 = arith.divf %2, %3 : vector<2x1xf32>
    %5 = vector.broadcast %4 : vector<2x1xf32> to vector<2x32xf32>
    %6 = arith.subf %0, %5 : vector<2x32xf32>
    %7 = arith.mulf %6, %6 : vector<2x32xf32>
    %cst_2 = arith.constant dense<0.000000e+00> : vector<2xf32>
    %8 = vector.multi_reduction <add>, %7, %cst_2 [1] : vector<2x32xf32> to vector<2xf32>
    %9 = vector.shape_cast %8 : vector<2xf32> to vector<2x1xf32>
    %cst_3 = arith.constant 3.200000e+01 : f32
    %10 = vector.broadcast %cst_3 : f32 to vector<2x1xf32>
    %11 = arith.divf %9, %10 : vector<2x1xf32>
    %12 = vector.broadcast %4 : vector<2x1xf32> to vector<2x32xf32>
    %13 = arith.subf %0, %12 : vector<2x32xf32>
    %cst_4 = arith.constant 9.99999974E-6 : f32
    %14 = vector.broadcast %cst_4 : f32 to vector<2x1xf32>
    %15 = arith.addf %11, %14 : vector<2x1xf32>
    %16 = math.rsqrt %15 : vector<2x1xf32>
    %17 = vector.broadcast %16 : vector<2x1xf32> to vector<2x32xf32>
    %18 = arith.mulf %13, %17 : vector<2x32xf32>
    %c0_5 = arith.constant 0 : index
    %c0_6 = arith.constant 0 : index
    %19 = vector.load %arg1[%c0_5, %c0_6] : memref<1x32xf32, #tpu.memory_space<vmem>>, vector<1x32xf32>
    %20 = vector.broadcast %19 : vector<1x32xf32> to vector<2x32xf32>
    %21 = arith.mulf %18, %20 : vector<2x32xf32>
    %c0_7 = arith.constant 0 : index
    %c0_8 = arith.constant 0 : index
    %22 = vector.load %arg2[%c0_7, %c0_8] : memref<1x32xf32, #tpu.memory_space<vmem>>, vector<1x32xf32>
    %23 = vector.broadcast %22 : vector<1x32xf32> to vector<2x32xf32>
    %24 = arith.addf %21, %23 : vector<2x32xf32>
    %25 = arith.truncf %24 : vector<2x32xf32> to vector<2x32xbf16>
    %c0_9 = arith.constant 0 : index
    %c0_10 = arith.constant 0 : index
    %26 = vector.load %arg3[%c0_9, %c0_10] : memref<32x32xbf16, #tpu.memory_space<vmem>>, vector<32x32xbf16>
    %cst_11 = arith.constant dense<0.000000e+00> : vector<2x32xf32>
    %27 = tpu.matmul %25, %26, %cst_11 {dimension_numbers = #tpu.dot_dimension_numbers<[1], [0], [0], [1], [0, 0, 1, 1], [], []>} : vector<2x32xbf16>, vector<32x32xbf16>, vector<2x32xf32> -> vector<2x32xf32>
    %c0_12 = arith.constant 0 : index
    %c0_13 = arith.constant 0 : index
    %28 = vector.load %arg4[%c0_12, %c0_13] : memref<32x48xf32, #tpu.memory_space<vmem>>, vector<32x48xf32>
    %cst_14 = arith.constant dense<0.000000e+00> : vector<2x48xf32>
    %29 = tpu.matmul %27, %28, %cst_14 {dimension_numbers = #tpu.dot_dimension_numbers<[1], [0], [0], [1], [0, 0, 1, 1], [], []>} : vector<2x32xf32>, vector<32x48xf32>, vector<2x48xf32> -> vector<2x48xf32>
    %c0_15 = arith.constant 0 : index
    %c0_16 = arith.constant 0 : index
    %30 = vector.load %arg5[%c0_15, %c0_16] : memref<1x48xf32, #tpu.memory_space<vmem>>, vector<1x48xf32>
    %31 = vector.broadcast %30 : vector<1x48xf32> to vector<2x48xf32>
    %32 = arith.addf %29, %31 : vector<2x48xf32>
    %c0_17 = arith.constant 0 : index
    %c0_18 = arith.constant 0 : index
    %33 = vector.load %arg6[%c0_17, %c0_18] : memref<2x48xf32, #tpu.memory_space<vmem>>, vector<2x48xf32>
    tpu.vector_store %arg6[%c0_17, %c0_18], %32 {strides = array<i32>} : memref<2x48xf32, #tpu.memory_space<vmem>>, vector<2x48xf32>,
    return
  }
}

</mosaic_0001>

<bundles_post_ra>
// kernel: clip_text_encoder_forward.12
= control target key start
LH: loop header
LB: loop body
LE: loop exit
PB: predicated region body
PF: predicated region fallthrough
CT: control target
= control target key end

     0   :  { %s453_s15 = smov 0   ;;  %s500_s0 = inlined_call_operand.vmem [shape: bf16[16,128], index: 0, kind: input, shape index: {}]   ;;  %s501_s1 = inlined_call_operand.vmem [shape: bf16[128,32], index: 1, kind: input, shape index: {}]   ;;  %s502_s2 = inlined_call_operand.vmem [shape: f32[1,32], index: 2, kind: input, shape index: {}]   ;;  %s503_s3 = inlined_call_operand.vmem [shape: f32[16,32], index: 3, kind: input, shape index: {}]   ;;  %s504_s4 = inlined_call_operand.vmem [shape: f32[16,32], index: 4, kind: output, shape index: {}]  }
   0x1 LB: > { %s361_s16 = sadd.s32 4294967295, %s426_s15   ;;  %p365_p0 = scmp.ge.s32.totalorder %s426_s15, 1  ;;  %s426_s15 = sphi %s453_s15, %s14_s15  }
   0x2   : > { %p170_p1 = scmp.lt.s32.totalorder %s426_s15, 3 }
   0x4   : > { %p171_p2 = pnand %p365_p0, %p170_p1 }
   0x5   : > { %p198_p3 = scmp.lt.s32.totalorder (!%p171_p2), %s361_s16, 1 }
   0x6   : > { %174 = sbr.rel (%p171_p2) target bundleno = 177 (0xb1), region = 36 }
   0xb   : > { %v410_v0 = vld [vmem:[%s501_s1 + $0x38] sm:$0xff]  ;;  %v409_v1 = vld [vmem:[%s501_s1 + $0x30] sm:$0xff]  ;;  %v408_v2 = vld [vmem:[%s501_s1 + $0x28] sm:$0xff]  ;;  %s506_s16 = smov (!%p198_p3, %s361_s16), 1  ;;  %vm294_vm0 = vcmask 261120  }
   0xc   : > { %279 = vmatpush.bf16.msra.mxu0 %v410_v0  ;;  %v407_v3 = vld [vmem:[%s501_s1 + $0x20] sm:$0xff]  ;;  %v406_v4 = vld [vmem:[%s501_s1 + $0x18] sm:$0xff]  ;;  %v405_v5 = vld [vmem:[%s501_s1 + $0x10] sm:$0xff]  ;;  %s366_s5 = sshll.u32 %s506_s16, 2  ;;  %s367_s11 = sshll.u32 %s506_s16, 3 }
   0xd   : > { %v404_v6 = vld [vmem:[%s501_s1 + $0x8] sm:$0xff]  ;;  %v403_v7 = vld [vmem:[%s501_s1] sm:$0xff]  ;;  %s201_s10 = scalar_lea.vmem %s500_s0, %s366_s5  ;;  %s205_s14 = scalar_lea.vmem %s503_s3, %s367_s11 }
   0xe   : > { %v210_v8 = vld [vmem:[%s201_s10] sm:$0xf]  ;;  %s209_s21 = scalar_lea.vmem %s504_s4, %s367_s11 }
   0xf   : > { %v419_v9 = vld [vmem:[%s502_s2] ss:$0 sm:$0xff] }
  0x10   : > { %280 = vmatpush.bf16.msra.mxu0 %v409_v1  ;;  %v292_v11 = vld [vmem:[%s205_s14] sm:$0xff] }
  0x14   : > { %281 = vmatpush.bf16.msra.mxu0 %v408_v2 }
  0x18   : > { %282 = vmatpush.bf16.msra.mxu0 %v407_v3 }
  0x1c   : > { %283 = vmatpush.bf16.msra.mxu0 %v406_v4 }
  0x20   : > { %284 = vmatpush.bf16.msra.mxu0 %v405_v5 }
  0x24   : > { %285 = vmatpush.bf16.msra.mxu0 %v404_v6 }
  0x28   : > { %286 = vmatpush.bf16.msra.mxu0 %v403_v7 }
  0x2b   : > { %287 = vmatmul.bf16.vlgmr.msra.gmra.mxu0 %v210_v8 }
  0xa8   : > { %v288_v10 = vpop.f32.mrf.mxu0 }
  0xa9   : > { %v289_v12 = vadd.f32 %v419_v9, %v288_v10 }
  0xab   : > { %v293_v13 = vadd.f32 %v292_v11, %v289_v12 }
  0xad   : > { %295 = vst.msk [vmem:[%s209_s21] sm:$0xff] %vm294_vm0, %v293_v13 }
  0xb0   : > { %v290_v14 = vpop.f32.mrf.mxu0 }
  0xb1 PF: > { %s14_s15 = sadd.s32 1, %s426_s15  }
  0xb2   : > { %p11_p4 = scmp.ge.s32.totalorder %s14_s15, 4  }
  0xb4   :  { %13 = sbr.rel (!%p11_p4) target bundleno = 1 (0x1), region = 69 }

// kernel: clip_text_encoder_forward.11
= control target key start
LH: loop header
LB: loop body
LE: loop exit
PB: predicated region body
PF: predicated region fallthrough
CT: control target
= control target key end

     0   :  { %s455_s18 = smov 0   ;;  %s494_s0 = inlined_call_operand.vmem [shape: f32[16,32], index: 0, kind: input, shape index: {}]   ;;  %s495_s1 = inlined_call_operand.vmem [shape: f32[1,32], index: 1, kind: input, shape index: {}]   ;;  %s496_s2 = inlined_call_operand.vmem [shape: f32[1,32], index: 2, kind: input, shape index: {}]   ;;  %s497_s3 = inlined_call_operand.vmem [shape: bf16[32,128], index: 3, kind: input, shape index: {}]   ;;  %s498_s4 = inlined_call_operand.vmem [shape: f32[1,128], index: 4, kind: input, shape index: {}]   ;;  %s499_s5 = inlined_call_operand.vmem [shape: bf16[16,128], index: 5, kind: output, shape index: {}]  }
   0x1 LB: > { %s375_s19 = sadd.s32 4294967295, %s422_s18   ;;  %p379_p0 = scmp.ge.s32.totalorder %s422_s18, 1  ;;  %s422_s18 = sphi %s455_s18, %s15_s18  }
   0x2   : > { %p186_p1 = scmp.lt.s32.totalorder %s422_s18, 3 }
   0x4   : > { %p187_p2 = pnand %p379_p0, %p186_p1 }
   0x5   : > { %p212_p3 = scmp.lt.s32.totalorder (!%p187_p2), %s375_s19, 1 }
   0x6   : > { %190 = sbr.rel (%p187_p2) target bundleno = 448 (0x1c0), region = 40 }
   0xb   : > { %s501_s19 = smov (!%p212_p3, %s375_s19), 1  ;;  %vm222_vm0 = vcmask 261120   ;;  %v424_v2 = vmov 32.0   ;;  %v395_v14 = vld [vmem:[%s497_s3 + $0x8] sm:$0xff]  ;;  %v394_v15 = vld [vmem:[%s497_s3] sm:$0xff] }
   0xc   : > { %s380_s20 = sshll.u32 %s501_s19, 3  ;;  %408 = vrcp.f32 %v424_v2  ;;  %292 = vmatpush.bf16.msra.mxu0 %v395_v14  ;;  %v405_v25 = vld [vmem:[%s495_s1] ss:$0 sm:$0xff]  ;;  %s381_s9 = sshll.u32 %s501_s19, 2 }
   0xd   : > { %s215_s23 = scalar_lea.vmem %s494_s0, %s380_s20  ;;  %v406_v28 = vld [vmem:[%s496_s2] ss:$0 sm:$0xff]  ;;  %s219_s12 = scalar_lea.vmem %s499_s5, %s381_s9 }
   0xe   : > { %v221_v0 = vld [vmem:[%s215_s23] sm:$0xff] }
   0xf   : > { %v223_v1 = vsel %vm222_vm0, %v221_v0, 0.0  ;;  %v407_v32 = vld [vmem:[%s498_s4] ss:$0 sm:$0xff] }
  0x10   : > { %224 = vadd.xlane.f32.xlu0 %v223_v1  ;;  %293 = vmatpush.bf16.msra.mxu0 %v394_v15 }
  0x12   : > { %v409_v3 = vpop.eup %408 }
  0x13   : > { %v227_v4 = vmul.f32 32.0, %v409_v3  ;;  %vm231_vm1 = vweird.f32 %v409_v3 }
  0x15   : > { %v228_v5 = vsub.f32 1.0, %v227_v4 }
  0x17   : > { %v229_v6 = vmul.f32 %v409_v3, %v228_v5 }
  0x19   : > { %v230_v7 = vadd.f32 %v409_v3, %v229_v6 }
  0x1b   : > { %v232_v8 = vsel %vm231_vm1, %v409_v3, %v230_v7 }
  0x83   : > { %v225_v9 = vpop.xlane.xlu0 %224 }
  0x84   : > { %v233_v10 = vmul.f32 %v232_v8, %v225_v9 }
  0x86   : > { %v234_v11 = vsub.f32 %v221_v0, %v233_v10 }
  0x88   : > { %v235_v12 = vmul.f32 %v234_v11, %v234_v11 }
  0x8a   : > { %v236_v13 = vsel %vm222_vm0, %v235_v12, 0.0 }
  0x8b   : > { %237 = vadd.xlane.f32.xlu0 %v236_v13 }
  0xfe   : > { %v238_v16 = vpop.xlane.xlu0 %237 }
  0xff   : > { %v239_v17 = vmul.f32 %v238_v16, %v232_v8 }
 0x101   : > { %v240_v18 = vadd.f32 1e-05, %v239_v17 }
 0x103   : > { %410 = vrsqrt.f32 %v240_v18  ;;  %vm247_vm3 = vweird.f32 %v240_v18 }
 0x109   : > { %v411_v19 = vpop.eup %410 }
 0x10a   : > { %v242_v20 = vmul.f32 %v411_v19, %v240_v18  ;;  %vm248_vm2 = vweird.f32 %v411_v19 }
 0x10b   : > { %vm249_vm4 = vmor %vm247_vm3, %vm248_vm2 }
 0x10c   : > { %v243_v21 = vmul.f32 %v411_v19, %v242_v20 }
 0x10e   : > { %v244_v22 = vmul.f32 0.5, %v243_v21 }
 0x110   : > { %v245_v23 = vsub.f32 1.5, %v244_v22 }
 0x112   : > { %v246_v24 = vmul.f32 %v411_v19, %v245_v23 }
 0x114   : > { %v250_v26 = vsel %vm249_vm4, %v411_v19, %v246_v24 }
 0x115   : > { %v251_v27 = vmul.f32 %v250_v26, %v234_v11 }
 0x117   : > { %v256_v29 = vmul.f32 %v405_v25, %v251_v27 }
 0x119   : > { %v261_v30 = vadd.f32 %v406_v28, %v256_v29 }
 0x11b   : > { %v262_v31 = vpack.c.bf16 %v261_v30, %v261_v30 }
 0x11d   : > { %390 = vmatmul.msk.bf16.vlgmr.msra.gmra.mxu0 %vm222_vm0, %v262_v31 }
 0x19a   : > { %v295_v33 = vpop.f32.mrf.mxu0 }
 0x19b   : > { %v296_v34 = vadd.f32 %v407_v32, %v295_v33 }
 0x19d   : > { %v391_v35 = vmul.f32 -1.702, %v296_v34 }
 0x19f   : > { %v301_v36 = vmul.f32 1.442695, %v391_v35 }
 0x1a1   : > { %412 = vpow2.f32 %v301_v36 }
 0x1a2   : > { %v297_v37 = vpop.f32.mrf.mxu0 }
 0x1a7   : > { %v413_v38 = vpop.eup %412 }
 0x1a8   : > { %v303_v39 = vadd.f32 1.0, %v413_v38 }
 0x1aa   : > { %414 = vrcp.f32 %v303_v39  ;;  %v315_v43 = vand.u32 2147483648, %v303_v39  ;;  %v313_v45 = vand.u32 2147483647, %v303_v39  ;;  %vm309_vm6 = vweird.f32 %v303_v39 }
 0x1ac   : > { %v316_v47 = vor.u32 1.1754944e-38, %v315_v43  ;;  %vm314_vm8 = vcmp.eq.f32.partialorder %v313_v45, 8.507059e+37 }
 0x1b0   : > { %v415_v40 = vpop.eup %414 }
 0x1b1   : > { %v305_v41 = vmul.f32 %v415_v40, %v303_v39  ;;  %vm310_vm5 = vweird.f32 %v415_v40 }
 0x1b2   : > { %vm311_vm7 = vmor %vm309_vm6, %vm310_vm5 }
 0x1b3   : > { %v306_v42 = vsub.f32 1.0, %v305_v41 }
 0x1b5   : > { %v307_v44 = vmul.f32 %v415_v40, %v306_v42 }
 0x1b7   : > { %v308_v46 = vadd.f32 %v415_v40, %v307_v44 }
 0x1b9   : > { %v312_v48 = vsel %vm311_vm7, %v415_v40, %v308_v46 }
 0x1ba   : > { %v317_v49 = vsel %vm314_vm8, %v316_v47, %v312_v48 }
 0x1bb   : > { %v319_v50 = vmul.f32 %v317_v49, %v296_v34 }
 0x1bd   : > { %v320_v51 = vpack.c.bf16 %v319_v50, %v319_v50 }
 0x1bf   : > { %321 = vst [vmem:[%s219_s12] sm:$0xf] %v320_v51 }
 0x1c0 PF: > { %s15_s18 = sadd.s32 1, %s422_s18  }
 0x1c1   : > { %p12_p4 = scmp.ge.s32.totalorder %s15_s18, 4  }
 0x1c3   :  { %14 = sbr.rel (!%p12_p4) target bundleno = 1 (0x1), region = 70 }

// kernel: clip_text_encoder_forward.9
= control target key start
LH: loop header
LB: loop body
LE: loop exit
PB: predicated region body
PF: predicated region fallthrough
CT: control target
= control target key end

     0   :  { %s430_s18 = smov 0   ;;  %s469_s0 = inlined_call_operand.vmem [shape: f32[16,32], index: 0, kind: input, shape index: {}]   ;;  %s470_s1 = inlined_call_operand.vmem [shape: f32[1,32], index: 1, kind: input, shape index: {}]   ;;  %s471_s2 = inlined_call_operand.vmem [shape: f32[1,32], index: 2, kind: input, shape index: {}]   ;;  %s472_s3 = inlined_call_operand.vmem [shape: bf16[32,96], index: 3, kind: input, shape index: {}]   ;;  %s473_s4 = inlined_call_operand.vmem [shape: f32[1,96], index: 4, kind: input, shape index: {}]   ;;  %s474_s5 = inlined_call_operand.vmem [shape: bf16[16,96], index: 5, kind: output, shape index: {}]  }
   0x1 LB: > { %s355_s19 = sadd.s32 4294967295, %s397_s18   ;;  %p359_p0 = scmp.ge.s32.totalorder %s397_s18, 1  ;;  %s397_s18 = sphi %s430_s18, %s15_s18  }
   0x2   : > { %p186_p1 = scmp.lt.s32.totalorder %s397_s18, 3 }
   0x4   : > { %p187_p2 = pnand %p359_p0, %p186_p1 }
   0x5   : > { %p212_p3 = scmp.lt.s32.totalorder (!%p187_p2), %s355_s19, 1 }
   0x6   : > { %190 = sbr.rel (%p187_p2) target bundleno = 419 (0x1a3), region = 40 }
   0xb   : > { %s476_s19 = smov (!%p212_p3, %s355_s19), 1  ;;  %vm222_vm0 = vcmask 261120   ;;  %v399_v2 = vmov 32.0   ;;  %v374_v14 = vld [vmem:[%s472_s3 + $0x8] sm:$0xff]  ;;  %v373_v15 = vld [vmem:[%s472_s3] sm:$0xff]  ;;  %vm300_vm5 = vcmask 781312  }
   0xc   : > { %s360_s20 = sshll.u32 %s476_s19, 3  ;;  %387 = vrcp.f32 %v399_v2  ;;  %292 = vmatpush.bf16.msra.mxu0 %v374_v14  ;;  %v384_v25 = vld [vmem:[%s470_s1] ss:$0 sm:$0xff]  ;;  %s361_s9 = sshll.u32 %s476_s19, 2 }
   0xd   : > { %s215_s23 = scalar_lea.vmem %s469_s0, %s360_s20  ;;  %v385_v28 = vld [vmem:[%s471_s2] ss:$0 sm:$0xff]  ;;  %s219_s12 = scalar_lea.vmem %s474_s5, %s361_s9 }
   0xe   : > { %v221_v0 = vld [vmem:[%s215_s23] sm:$0xff] }
   0xf   : > { %v223_v1 = vsel %vm222_vm0, %v221_v0, 0.0  ;;  %v386_v32 = vld [vmem:[%s473_s4] ss:$0 sm:$0xff] }
  0x10   : > { %224 = vadd.xlane.f32.xlu0 %v223_v1  ;;  %293 = vmatpush.bf16.msra.mxu0 %v373_v15 }
  0x12   : > { %v388_v3 = vpop.eup %387 }
  0x13   : > { %v227_v4 = vmul.f32 32.0, %v388_v3  ;;  %vm231_vm1 = vweird.f32 %v388_v3 }
  0x15   : > { %v228_v5 = vsub.f32 1.0, %v227_v4 }
  0x17   : > { %v229_v6 = vmul.f32 %v388_v3, %v228_v5 }
  0x19   : > { %v230_v7 = vadd.f32 %v388_v3, %v229_v6 }
  0x1b   : > { %v232_v8 = vsel %vm231_vm1, %v388_v3, %v230_v7 }
  0x83   : > { %v225_v9 = vpop.xlane.xlu0 %224 }
  0x84   : > { %v233_v10 = vmul.f32 %v232_v8, %v225_v9 }
  0x86   : > { %v234_v11 = vsub.f32 %v221_v0, %v233_v10 }
  0x88   : > { %v235_v12 = vmul.f32 %v234_v11, %v234_v11 }
  0x8a   : > { %v236_v13 = vsel %vm222_vm0, %v235_v12, 0.0 }
  0x8b   : > { %237 = vadd.xlane.f32.xlu0 %v236_v13 }
  0xfe   : > { %v238_v16 = vpop.xlane.xlu0 %237 }
  0xff   : > { %v239_v17 = vmul.f32 %v238_v16, %v232_v8 }
 0x101   : > { %v240_v18 = vadd.f32 1e-05, %v239_v17 }
 0x103   : > { %389 = vrsqrt.f32 %v240_v18  ;;  %vm247_vm3 = vweird.f32 %v240_v18 }
 0x109   : > { %v390_v19 = vpop.eup %389 }
 0x10a   : > { %v242_v20 = vmul.f32 %v390_v19, %v240_v18  ;;  %vm248_vm2 = vweird.f32 %v390_v19 }
 0x10b   : > { %vm249_vm4 = vmor %vm247_vm3, %vm248_vm2 }
 0x10c   : > { %v243_v21 = vmul.f32 %v390_v19, %v242_v20 }
 0x10e   : > { %v244_v22 = vmul.f32 0.5, %v243_v21 }
 0x110   : > { %v245_v23 = vsub.f32 1.5, %v244_v22 }
 0x112   : > { %v246_v24 = vmul.f32 %v390_v19, %v245_v23 }
 0x114   : > { %v250_v26 = vsel %vm249_vm4, %v390_v19, %v246_v24 }
 0x115   : > { %v251_v27 = vmul.f32 %v250_v26, %v234_v11 }
 0x117   : > { %v256_v29 = vmul.f32 %v384_v25, %v251_v27 }
 0x119   : > { %v261_v30 = vadd.f32 %v385_v28, %v256_v29 }
 0x11b   : > { %v262_v31 = vpack.c.bf16 %v261_v30, %v261_v30 }
 0x11d   : > { %370 = vmatmul.msk.bf16.vlgmr.msra.gmra.mxu0 %vm222_vm0, %v262_v31 }
 0x19a   : > { %v295_v33 = vpop.f32.mrf.mxu0 }
 0x19b   : > { %v296_v34 = vadd.f32 %v386_v32, %v295_v33 }
 0x19d   : > { %v299_v35 = vpack.c.bf16 %v296_v34, %v296_v34 }
 0x19f   : > { %301 = vst.msk [vmem:[%s219_s12] sm:$0xf] %vm300_vm5, %v299_v35 }
 0x1a2   : > { %v297_v36 = vpop.f32.mrf.mxu0 }
 0x1a3 PF: > { %s15_s18 = sadd.s32 1, %s397_s18  }
 0x1a4   : > { %p12_p4 = scmp.ge.s32.totalorder %s15_s18, 4  }
 0x1a6   :  { %14 = sbr.rel (!%p12_p4) target bundleno = 1 (0x1), region = 70 }

// kernel: clip_text_encoder_forward.10
= control target key start
LH: loop header
LB: loop body
LE: loop exit
PB: predicated region body
PF: predicated region fallthrough
CT: control target
= control target key end

     0   :  { %s704_s15 = smov 0   ;;  %s790_s0 = inlined_call_operand.vmem [shape: bf16[2,8,96], index: 0, kind: input, shape index: {}]   ;;  %s791_s1 = inlined_call_operand.vmem [shape: bf16[32,32], index: 1, kind: input, shape index: {}]   ;;  %s792_s2 = inlined_call_operand.vmem [shape: f32[1,32], index: 2, kind: input, shape index: {}]   ;;  %s793_s3 = inlined_call_operand.vmem [shape: f32[2,8,32], index: 3, kind: input, shape index: {}]   ;;  %s794_s4 = inlined_call_operand.vmem [shape: f32[2,8,32], index: 4, kind: output, shape index: {}]  }
   0x1 LB: > { %s589_s16 = sadd.s32 4294967295, %s663_s15   ;;  %p593_p0 = scmp.ge.s32.totalorder %s663_s15, 1  ;;  %s663_s15 = sphi %s704_s15, %s14_s15  }
   0x2   : > { %p170_p1 = scmp.lt.s32.totalorder %s663_s15, 3 }
   0x4   : > { %p171_p2 = pnand %p593_p0, %p170_p1 }
   0x5   : > { %p198_p3 = scmp.lt.s32.totalorder (!%p171_p2), %s589_s16, 1  ;;  %s665_s21 = smov (!%p171_p2), 96  }
   0x6   : > { %174 = sbr.rel (%p171_p2) target bundleno = 1344 (0x540), region = 36  ;;  %s666_s22 = smov (!%p171_p2), 88  }
   0x7   : > { %s667_s23 = smov (!%p171_p2), 120   ;;  %s668_s24 = smov (!%p171_p2), 64  }
   0x8   : > { %s669_s25 = smov (!%p171_p2), 80   ;;  %s670_s26 = smov (!%p171_p2), 72  }
   0x9   : > { %s671_s27 = smov (!%p171_p2), 112   ;;  %s672_s28 = smov (!%p171_p2), 104  }
   0xa   : > { %s673_s29 = smov (!%p171_p2), 56   ;;  %s674_s30 = smov (!%p171_p2), 40  }
   0xb   : > { %s796_s16 = smov (!%p198_p3, %s589_s16), 1  ;;  %vm222_vm0 = vcmask 64512   ;;  %v211_v8 = vlaneseq  ;;  %vm261_vm2 = vcmask 1043456   ;;  %s675_s5 = smov 48   ;;  %vm474_vm3 = vcmask 130048  }
   0xc   : > { %s594_s17 = sshll.u32 %s796_s16, 2  ;;  %s676_s6 = smov 8   ;;  %vm477_vm4 = vcmask 195584   ;;  %vm481_vm5 = vcmask 257024   ;;  %vm504_vm6 = vcmask 261120  }
   0xd   : > { %s201_s20 = scalar_lea.vmem %s790_s0, %s594_s17  ;;  %v732_v9 = vshrl.u32 %v211_v8, 7  ;;  %v214_v10 = vand.u32 127, %v211_v8  ;;  %s677_s7 = smov 16  }
   0xe   : > { %v216_v0 = vld [vmem:[%s201_s20] sm:$0xf]  ;;  %s678_s8 = smov 24   ;;  %s595_s13 = sshll.u32 %s796_s16, 3 }
   0xf   : > { %v218_v1 = vunpack.c.l.b16 %v216_v0  ;;  %vm215_vm1 = vcmp.le.s32.totalorder %v214_v10, %v732_v9  ;;  %s205_s18 = scalar_lea.vmem %s793_s3, %s595_s13 }
  0x11   : > { %v718_v2 = vpack.c.b16 %v218_v1, %v218_v1 }
  0x13   : > { %220 = vrot.lane.b32.xlu0 %v718_v2, %s665_s21  ;;  %281 = vrot.lane.b32.xlu1 %v718_v2, %s666_s22 }
  0x14   : > { %279 = vrot.lane.b32.xlu2 %v718_v2, %s667_s23  ;;  %s209_s23 = scalar_lea.vmem %s794_s4, %s595_s13 }
  0x1c   : > { %256 = vrot.lane.b32.xlu2 %v718_v2, %s668_s24 }
  0x24   : > { %340 = vrot.lane.b32.xlu2 %v718_v2, %s669_s25 }
  0x2c   : > { %399 = vrot.lane.b32.xlu2 %v718_v2, %s670_s26 }
  0x34   : > { %338 = vrot.lane.b32.xlu2 %v718_v2, %s671_s27 }
  0x3c   : > { %397 = vrot.lane.b32.xlu2 %v718_v2, %s672_s28 }
  0x6e   : > { %v280_v7 = vpop.permute.xlu2 %279 }
  0x76   : > { %v257_v16 = vpop.permute.xlu2 %256 }
  0x77   : > { %v263_v21 = vsel %vm261_vm2, %v257_v16, 0 }
  0x78   : > { %272 = vmatpush.bf16.msra.mxu1 %v263_v21 }
  0x7e   : > { %v341_v17 = vpop.permute.xlu2 %340 }
  0x7f   : > { %v346_v19 = vsel %vm222_vm0, %v341_v17, 0 }
  0x80   : > { %355 = vmatpush.bf16.xpose.msrb.mxu1 %v346_v19 }
  0x85   : > { %v221_v3 = vpop.permute.xlu0 %220  ;;  %v282_v5 = vpop.permute.xlu1 %281 }
  0x86   : > { %v227_v4 = vsel %vm222_vm0, %v221_v3, 0  ;;  %v287_v6 = vsel %vm222_vm0, %v282_v5, 0  ;;  %v400_v18 = vpop.permute.xlu2 %399 }
  0x87   : > { %236 = vmatpush.bf16.xpose.msra.mxu0 %v227_v4  ;;  %296 = vmatpush.bf16.xpose.msra.mxu2 %v287_v6  ;;  %v405_v20 = vsel %vm222_vm0, %v400_v18, 0 }
  0x8e   : > { %597 = vmatmul.msk.bf16.vlgmr.msra.gmra.mxu0 %vm222_vm0, %v216_v0  ;;  %599 = vmatmul.msk.bf16.vlgmr.msra.gmra.mxu2 %vm222_vm0, %v280_v7  ;;  %v339_v22 = vpop.permute.xlu2 %338 }
  0x8f   : > { %414 = vmatpush.bf16.xpose.msrb.mxu0 %v405_v20 }
  0x96   : > { %v398_v24 = vpop.permute.xlu2 %397 }
  0x9e   : > { %603 = vmatmul.msk.bf16.vlgmr.msrb.gmra.mxu0 %vm222_vm0, %v398_v24 }
 0x10b   : > { %v238_v11 = vpop.f32.mrf.mxu0 }
 0x10c   : > { %v242_v12 = vmul.f32 0.35355338, %v238_v11 }
 0x10e   : > { %v243_v13 = vsel %vm215_vm1, %v242_v12, -1e+30 }
 0x10f   : > { %v244_v14 = vsel %vm222_vm0, %v243_v13, -inf }
 0x110   : > { %245 = vmax.xlane.f32.xlu0 %v244_v14 }
 0x111   : > { %v298_v23 = vpop.f32.mrf.mxu2 }
 0x112   : > { %v302_v25 = vmul.f32 0.35355338, %v298_v23 }
 0x113   : > { %v240_v15 = vpop.f32.mrf.mxu0 }
 0x114   : > { %v303_v26 = vsel %vm215_vm1, %v302_v25, -1e+30 }
 0x115   : > { %v304_v28 = vsel %vm222_vm0, %v303_v26, -inf }
 0x116   : > { %305 = vmax.xlane.f32.xlu2 %v304_v28 }
 0x119   : > { %v300_v31 = vpop.f32.mrf.mxu2 }
 0x11b   : > { %v416_v34 = vpop.f32.mrf.mxu0 }
 0x11c   : > { %v420_v35 = vmul.f32 0.35355338, %v416_v34  ;;  %v617_v34 = vld [vmem:[%s791_s1 + $0x8] sm:$0xff] }
 0x11e   : > { %v421_v36 = vsel %vm215_vm1, %v420_v35, -1e+30  ;;  %v616_v35 = vld [vmem:[%s791_s1] sm:$0xff] }
 0x11f   : > { %v422_v38 = vsel %vm222_vm0, %v421_v36, -inf }
 0x123   : > { %v418_v39 = vpop.f32.mrf.mxu0 }
 0x183   : > { %v246_v27 = vpop.xlane.xlu0 %245 }
 0x184   : > { %v247_v29 = vsub.f32 %v243_v13, %v246_v27 }
 0x186   : > { %v248_v30 = vmul.f32 1.442695, %v247_v29 }
 0x188   : > { %641 = vpow2.f32 %v248_v30 }
 0x189   : > { %v306_v44 = vpop.xlane.xlu2 %305 }
 0x18a   : > { %v307_v46 = vsub.f32 %v303_v26, %v306_v44 }
 0x18c   : > { %v308_v47 = vmul.f32 1.442695, %v307_v46  ;;  %v521_v46 = vld [vmem:[%s205_s18] sm:$0xff] }
 0x18e   : > { %v642_v32 = vpop.eup %641 }
 0x18f   : > { %v250_v33 = vsel %vm222_vm0, %v642_v32, 0.0 }
 0x190   : > { %251 = vadd.xlane.f32.xlu1 %v250_v33 }
 0x198   : > { %423 = vmax.xlane.f32.xlu1 %v422_v38 }
 0x1b1   : > { %316 = vrot.lane.b32.xlu1 %v718_v2, %s673_s29 }
 0x1b9   : > { %434 = vrot.lane.b32.xlu1 %v718_v2, %s674_s30 }
 0x203   : > { %v252_v37 = vpop.xlane.xlu1 %251 }
 0x204   : > { %643 = vrcp.f32 %v252_v37 }
 0x205   : > { %645 = vpow2.f32 %v308_v47 }
 0x20a   : > { %v644_v40 = vpop.eup %643 }
 0x20b   : > { %v254_v41 = vmul.f32 %v644_v40, %v642_v32  ;;  %v424_v48 = vpop.xlane.xlu1 %423  ;;  %v646_v56 = vpop.eup %645 }
 0x20c   : > { %v425_v51 = vsub.f32 %v421_v36, %v424_v48  ;;  %v310_v57 = vsel %vm222_vm0, %v646_v56, 0.0 }
 0x20d   : > { %v255_v42 = vpack.c.bf16 %v254_v41, %v254_v41 }
 0x20e   : > { %v426_v54 = vmul.f32 1.442695, %v425_v51 }
 0x20f   : > { %598 = vmatmul.msk.bf16.vlgmr.msra.gmra.mxu1 %vm222_vm0, %v255_v42 }
 0x210   : > { %647 = vpow2.f32 %v426_v54  ;;  %514 = vmatpush.bf16.msra.mxu1 %v617_v34 }
 0x214   : > { %515 = vmatpush.bf16.msra.mxu1 %v616_v35 }
 0x216   : > { %v648_v58 = vpop.eup %647 }
 0x217   : > { %v428_v59 = vsel %vm222_vm0, %v648_v58, 0.0 }
 0x21f   : > { %601 = vmatmul.msk.bf16.vlgmr.msrb.gmra.mxu1 %vm222_vm0, %v339_v22 }
 0x223   : > { %v317_v60 = vpop.permute.xlu1 %316 }
 0x224   : > { %v322_v61 = vsel %vm261_vm2, %v317_v60, 0 }
 0x225   : > { %331 = vmatpush.bf16.msra.mxu3 %v322_v61 }
 0x22b   : > { %v435_v62 = vpop.permute.xlu1 %434 }
 0x22c   : > { %v440_v63 = vsel %vm261_vm2, %v435_v62, 0 }
 0x22d   : > { %449 = vmatpush.bf16.msrb.mxu2 %v440_v63 }
 0x28c   : > { %v753_v43 = vpop.f32.mrf.mxu1 }
 0x28d   : > { %v278_v38 = vpack.c.bf16 %v753_v43, %v753_v43  ;;  %v640_v43 = vld [vmem:[%s792_s2] ss:$0 sm:$0xff] }
 0x294   : > { %v276_v45 = vpop.f32.mrf.mxu1 }
 0x29c   : > { %v357_v49 = vpop.f32.mrf.mxu1 }
 0x29d   : > { %v361_v50 = vmul.f32 0.35355338, %v357_v49 }
 0x29f   : > { %v362_v52 = vsel %vm215_vm1, %v361_v50, -1e+30 }
 0x2a0   : > { %v363_v53 = vsel %vm222_vm0, %v362_v52, -inf }
 0x2a1   : > { %364 = vmax.xlane.f32.xlu0 %v363_v53 }
 0x2a4   : > { %v359_v55 = vpop.f32.mrf.mxu1 }
 0x2a9   : > { %311 = vadd.xlane.f32.xlu0 %v310_v57 }
 0x2b1   : > { %429 = vadd.xlane.f32.xlu0 %v428_v59 }
 0x314   : > { %v365_v0 = vpop.xlane.xlu0 %364 }
 0x315   : > { %v366_v1 = vsub.f32 %v362_v52, %v365_v0 }
 0x317   : > { %v367_v3 = vmul.f32 1.442695, %v366_v1 }
 0x319   : > { %649 = vpow2.f32 %v367_v3 }
 0x31c   : > { %v312_v4 = vpop.xlane.xlu0 %311 }
 0x31d   : > { %651 = vrcp.f32 %v312_v4 }
 0x31f   : > { %v650_v5 = vpop.eup %649 }
 0x320   : > { %v369_v6 = vsel %vm222_vm0, %v650_v5, 0.0 }
 0x321   : > { %370 = vadd.xlane.f32.xlu0 %v369_v6 }
 0x323   : > { %v652_v7 = vpop.eup %651 }
 0x324   : > { %v430_v8 = vpop.xlane.xlu0 %429  ;;  %v314_v9 = vmul.f32 %v652_v7, %v646_v56 }
 0x325   : > { %653 = vrcp.f32 %v430_v8 }
 0x326   : > { %v315_v10 = vpack.c.bf16 %v314_v9, %v314_v9 }
 0x328   : > { %600 = vmatmul.msk.bf16.vlgmr.msra.gmra.mxu3 %vm222_vm0, %v315_v10 }
 0x32b   : > { %v654_v11 = vpop.eup %653 }
 0x32c   : > { %v432_v12 = vmul.f32 %v654_v11, %v648_v58 }
 0x32e   : > { %v433_v13 = vpack.c.bf16 %v432_v12, %v432_v12 }
 0x330   : > { %604 = vmatmul.msk.bf16.vlgmr.msrb.gmra.mxu2 %vm222_vm0, %v433_v13 }
 0x335   : > { %375 = vrot.lane.b32.xlu0 %v718_v2, %s675_s5 }
 0x394   : > { %v371_v14 = vpop.xlane.xlu0 %370 }
 0x395   : > { %655 = vrcp.f32 %v371_v14 }
 0x39b   : > { %v656_v15 = vpop.eup %655 }
 0x39c   : > { %v373_v16 = vmul.f32 %v656_v15, %v650_v5 }
 0x39e   : > { %v374_v19 = vpack.c.bf16 %v373_v16, %v373_v16 }
 0x3a7   : > { %v376_v17 = vpop.permute.xlu0 %375 }
 0x3a8   : > { %v381_v18 = vsel %vm261_vm2, %v376_v17, 0 }
 0x3a9   : > { %390 = vmatpush.bf16.msrb.mxu3 %v381_v18 }
 0x3ab   : > { %v333_v20 = vpop.f32.mrf.mxu3 }
 0x3ac   : > { %v337_v21 = vpack.c.bf16 %v333_v20, %v333_v20  ;;  %602 = vmatmul.msk.bf16.vlgmr.msrb.gmra.mxu3 %vm222_vm0, %v374_v19 }
 0x3ae   : > { %v457_v22 = vunpack.c.l.b16 %v337_v21 }
 0x3b0   : > { %v458_v23 = vpack.c.b16 %v457_v22, %v457_v22 }
 0x3b2   : > { %459 = vrot.lane.b32.xlu2 %v458_v23, %s676_s6 }
 0x3b3   : > { %v335_v24 = vpop.f32.mrf.mxu3  ;;  %v451_v25 = vpop.f32.mrf.mxu2 }
 0x3b4   : > { %v455_v29 = vpack.c.bf16 %v451_v25, %v451_v25 }
 0x3b6   : > { %v467_v32 = vunpack.c.l.b16 %v455_v29 }
 0x3b8   : > { %v468_v33 = vpack.c.b16 %v467_v32, %v467_v32 }
 0x3bb   : > { %v453_v2 = vpop.f32.mrf.mxu2 }
 0x40c   : > { %v460_v37 = vpop.permute.xlu2 %459 }
 0x40d   : > { %v473_v39 = vsel %vm222_vm0, %v278_v38, %v460_v37 }
 0x42f   : > { %v392_v26 = vpop.f32.mrf.mxu3 }
 0x430   : > { %v396_v27 = vpack.c.bf16 %v392_v26, %v392_v26 }
 0x432   : > { %v462_v28 = vunpack.c.l.b16 %v396_v27 }
 0x434   : > { %v463_v30 = vpack.c.b16 %v462_v28, %v462_v28 }
 0x436   : > { %464 = vrot.lane.b32.xlu1 %v463_v30, %s677_s7 }
 0x437   : > { %v394_v31 = vpop.f32.mrf.mxu3 }
 0x43e   : > { %469 = vrot.lane.b32.xlu1 %v468_v33, %s678_s8 }
 0x4a8   : > { %v465_v36 = vpop.permute.xlu1 %464 }
 0x4a9   : > { %v476_v40 = vsel %vm474_vm3, %v473_v39, %v465_v36 }
 0x4b0   : > { %v470_v41 = vpop.permute.xlu1 %469 }
 0x4b1   : > { %v479_v42 = vsel %vm477_vm4, %v476_v40, %v470_v41 }
 0x4b2   : > { %482 = vst.msk [vmem:[#allocation2] sm:$0xf] %vm481_vm5, %v479_v42 }
 0x4b9   : > { %v483_v44 = vld [vmem:[#allocation2] sm:$0xf] }
 0x4ba   : > { %613 = vmatmul.msk.bf16.vlgmr.msra.gmra.mxu1 %vm504_vm6, %v483_v44 }
 0x537   : > { %v517_v45 = vpop.f32.mrf.mxu1 }
 0x538   : > { %v518_v47 = vadd.f32 %v640_v43, %v517_v45 }
 0x53a   : > { %v522_v48 = vadd.f32 %v521_v46, %v518_v47 }
 0x53c   : > { %523 = vst.msk [vmem:[%s209_s23] sm:$0xff] %vm504_vm6, %v522_v48 }
 0x53f   : > { %v519_v49 = vpop.f32.mrf.mxu1 }
 0x540 PF: > { %s14_s15 = sadd.s32 1, %s663_s15  }
 0x541   : > { %p11_p4 = scmp.ge.s32.totalorder %s14_s15, 4  }
 0x543   :  { %13 = sbr.rel (!%p11_p4) target bundleno = 1 (0x1), region = 69 }

// kernel: clip_text_encoder_forward.17
= control target key start
LH: loop header
LB: loop body
LE: loop exit
PB: predicated region body
PF: predicated region fallthrough
CT: control target
= control target key end

     0   :  { %vm26_vm0 = vcmask 254976   ;;  %s268_s0 = inlined_call_operand.vmem [shape: f32[2,32], index: 0, kind: input, shape index: {}]   ;;  %s269_s1 = inlined_call_operand.vmem [shape: f32[1,32], index: 1, kind: input, shape index: {}]   ;;  %s270_s2 = inlined_call_operand.vmem [shape: f32[1,32], index: 2, kind: input, shape index: {}]   ;;  %s271_s3 = inlined_call_operand.vmem [shape: bf16[32,32], index: 3, kind: input, shape index: {}]   ;;  %s272_s4 = inlined_call_operand.vmem [shape: f32[32,48], index: 4, kind: input, shape index: {}]   ;;  %s273_s5 = inlined_call_operand.vmem [shape: f32[1,48], index: 5, kind: input, shape index: {}]   ;;  %s274_s6 = inlined_call_operand.hbm [shape: f32[2,48], index: 6, kind: output, shape index: {}]  }
   0x1   :  { %v25_v0 = vld [vmem:[%s268_s0] sm:$0x3] }
   0x2   :  { %v27_v1 = vsel %vm26_vm0, %v25_v0, 0.0 }
   0x3   :  { %28 = vadd.xlane.f32.xlu0 %v27_v1 }
   0x4   :  { %11 = vsyncpa [#allocation3], 0  ;;  %v196_v2 = vmov 32.0   ;;  %v160_v14 = vld [vmem:[%s271_s3 + $0x8] sm:$0xff]  ;;  %v159_v15 = vld [vmem:[%s271_s3] sm:$0xff]  ;;  %vm83_vm5 = vcmask 261120  }
   0x5   :  { %166 = vrcp.f32 %v196_v2  ;;  %93 = vmatpush.bf16.msra.mxu0 %v160_v14  ;;  %v103_v16 = vld [vmem:[%s272_s4 + $0x18] sm:$0xff]  ;;  %v102_v17 = vld [vmem:[%s272_s4 + $0x10] sm:$0xff]  ;;  %v101_v20 = vld [vmem:[%s272_s4 + $0x8] sm:$0xff]  ;;  %s197_s14 = smov [#allocation2]   ;;  %s140_s17 = sshll.u32 %s274_s6, 4  ;;  %vm131_vm6 = vcmask 386048   ;;  %s141_s17 = int_to_ptr.hbm [resolvable:$true] %s140_s17 }
   0x6   :  { %123 = vmatpush.msra.mxu1 %v103_v16  ;;  %v163_v28 = vld [vmem:[%s269_s1] ss:$0 sm:$0xff]  ;;  %s138_s15 = sshll.u32 %s197_s14, 4  ;;  %s139_s15 = int_to_ptr.vmem [resolvable:$true] %s138_s15 }
   0x7   :  { %v164_v31 = vld [vmem:[%s270_s2] ss:$0 sm:$0xff] }
   0x8   :  { %124 = vmatpush.msra.mxu1 %v102_v17  ;;  %v100_v35 = vld [vmem:[%s272_s4] sm:$0xff] }
   0x9   :  { %94 = vmatpush.bf16.msra.mxu0 %v159_v15  ;;  %v165_v38 = vld [vmem:[%s273_s5] ss:$0 sm:$0xff] }
   0xa   :  { %125 = vmatpush.msra.mxu1 %v101_v20 }
   0xb   :  { %v167_v3 = vpop.eup %166 }
   0xc   :  { %v31_v4 = vmul.f32 32.0, %v167_v3  ;;  %vm35_vm1 = vweird.f32 %v167_v3  ;;  %126 = vmatpush.msra.mxu1 %v100_v35 }
   0xe   :  { %v32_v5 = vsub.f32 1.0, %v31_v4 }
  0x10   :  { %v33_v6 = vmul.f32 %v167_v3, %v32_v5 }
  0x12   :  { %v34_v7 = vadd.f32 %v167_v3, %v33_v6 }
  0x14   :  { %v36_v8 = vsel %vm35_vm1, %v167_v3, %v34_v7 }
  0x76   :  { %v29_v9 = vpop.xlane.xlu0 %28 }
  0x77   :  { %v37_v10 = vmul.f32 %v36_v8, %v29_v9 }
  0x79   :  { %v38_v11 = vsub.f32 %v25_v0, %v37_v10 }
  0x7b   :  { %v39_v12 = vmul.f32 %v38_v11, %v38_v11 }
  0x7d   :  { %v40_v13 = vsel %vm26_vm0, %v39_v12, 0.0 }
  0x7e   :  { %41 = vadd.xlane.f32.xlu0 %v40_v13 }
  0xf1   :  { %v42_v18 = vpop.xlane.xlu0 %41 }
  0xf2   :  { %v43_v19 = vmul.f32 %v42_v18, %v36_v8 }
  0xf4   :  { %v44_v21 = vadd.f32 1e-05, %v43_v19 }
  0xf6   :  { %168 = vrsqrt.f32 %v44_v21  ;;  %vm51_vm3 = vweird.f32 %v44_v21 }
  0xfc   :  { %v169_v22 = vpop.eup %168 }
  0xfd   :  { %v46_v23 = vmul.f32 %v169_v22, %v44_v21  ;;  %vm52_vm2 = vweird.f32 %v169_v22 }
  0xfe   :  { %vm53_vm4 = vmor %vm51_vm3, %vm52_vm2 }
  0xff   :  { %v47_v24 = vmul.f32 %v169_v22, %v46_v23 }
 0x101   :  { %v48_v25 = vmul.f32 0.5, %v47_v24 }
 0x103   :  { %v49_v26 = vsub.f32 1.5, %v48_v25 }
 0x105   :  { %v50_v27 = vmul.f32 %v169_v22, %v49_v26 }
 0x107   :  { %v54_v29 = vsel %vm53_vm4, %v169_v22, %v50_v27 }
 0x108   :  { %v55_v30 = vmul.f32 %v54_v29, %v38_v11 }
 0x10a   :  { %v60_v32 = vmul.f32 %v163_v28, %v55_v30 }
 0x10c   :  { %v65_v33 = vadd.f32 %v164_v31, %v60_v32 }
 0x10e   :  { %v66_v34 = vpack.c.bf16 %v65_v33, %v65_v33 }
 0x110   :  { %157 = vmatmul.msk.bf16.vlgmr.msra.gmra.mxu0 %vm83_vm5, %v66_v34 }
 0x18d   :  { %v96_v36 = vpop.f32.mrf.mxu0 }
 0x18e   :  { %158 = vmatmul.msk.f32.vlgmr.msra.gmra.mxu1 %vm83_vm5, %v96_v36 }
 0x195   :  { %v98_v37 = vpop.f32.mrf.mxu0 }
 0x20b   :  { %v128_v39 = vpop.f32.mrf.mxu1 }
 0x20c   :  { %v129_v40 = vadd.f32 %v165_v38, %v128_v39 }
 0x20e   :  { %132 = vst.msk [vmem:[#allocation2] sm:$0x3] %vm131_vm6, %v129_v40 }
 0x20f   :  { %143 = dma.vmem_to_hbm [thread:$0]  %s139_s15, 32, %s141_s17, [#allocation3]  }
 0x210   :  { %194 = dma.done.wait [#allocation3], 32  }
 0x211   :  { %195 = vsyncadd [#allocation3], 4294967264 }
 0x212   :  { %148 = vsyncpa [#allocation3], 1 }

</bundles_post_ra>
